<compile_context>
chip_gen: v5e
topology: v5e:2x2
jax: 0.10.0
libtpu: 0.0.40
codegen_flags: <defaults>
</compile_context>

<pallas_src>
import math

import jax
import jax.numpy as jnp
import numpy as np
from jax.experimental import pallas as pl
from jax.experimental.pallas import tpu as pltpu

_THRESH = 1.0 / 3.0


# ----------------------------------------------------------------------------
# The single fused kernel (runs once per batch block)
# ----------------------------------------------------------------------------
def _rnumber_kernel(x_ref, rcmix_ref, rcb32_ref, ws1_ref, b1_ref, ws2_ref, b2_ref,
                    fc1w_ref, fc1b_ref, fc2w_ref, fc2b_ref, fc3w_ref, fc3b_ref,
                    o_ref):
    f32 = jnp.float32
    bb = o_ref.shape[0]                         # batch block size

    def mm(a, w):                               # plain 2-D MXU matmul, batch in M
        return jnp.dot(a, w, preferred_element_type=f32)

    # ---- 2x nearest upsample + 3x3 smoothing conv (pad 1) + threshold -------
    # Column direction (upsample + pad + horizontal taps) folded into two prep
    # matrices; row direction is two shifted adds.  Output rows kept split as
    # even rows `te` / odd rows `to` of the 28x28 thresholded image.
    x2d = x_ref[...]                                               # (bb*14, 14)
    ymix = mm(x2d, rcmix_ref[...]).reshape(bb, 14, 28)             # 2/32*box + 23/32*mid
    yb32 = mm(x2d, rcb32_ref[...]).reshape(bb, 14, 28)             # 1/32*box
    zrow = jnp.zeros((bb, 1, 28), f32)
    prev = jnp.concatenate([zrow, yb32[:, 0:13, :]], axis=1)
    nxt = jnp.concatenate([yb32[:, 1:14, :], zrow], axis=1)
    e_pre = ymix + prev                                            # t rows 0,2,...,26
    o_pre = ymix + nxt                                             # t rows 1,3,...,27
    te = jnp.where(e_pre > _THRESH, e_pre, 0.0)                    # (bb, 14, 28)
    to = jnp.where(o_pre > _THRESH, o_pre, 0.0)

    # ---- conv1 (1->6, 5x5) + ReLU: ONE matmul ------------------------------
    # G rows = (b, i1 parity, i1//2); K = kh*28 + source column.
    # WS1 columns = (i2 parity, channel, i2//2) -> pooling is pure slice maxes.
    e01, e12, e23 = te[:, 0:12, :], te[:, 1:13, :], te[:, 2:14, :]
    o01, o12, o23 = to[:, 0:12, :], to[:, 1:13, :], to[:, 2:14, :]
    ga = jnp.concatenate([e01, o01, e12, o12, e23], axis=2)        # i1 even rows
    gb = jnp.concatenate([o01, e12, o12, e23, o23], axis=2)        # i1 odd rows
    g1 = jnp.concatenate([ga, gb], axis=1).reshape(bb * 24, 140)
    r1 = jnp.maximum(mm(g1, ws1_ref[...]) + b1_ref[...], 0.0)      # (bb*24, 144)

    # ---- maxpool 2x2 -> (bb, 12, 72), lanes = channel*12 + pooled column ----
    r1 = jnp.maximum(r1[:, 0:72], r1[:, 72:144]).reshape(bb, 24, 72)
    p1 = jnp.maximum(r1[:, 0:12, :], r1[:, 12:24, :])              # (bb, 12, 72)

    # ---- conv2 (6->16, 5x5) + ReLU: ONE matmul ------------------------------
    # K = kh*72 + in_ch*12 + source column; WS2 columns = (o2 parity, ch, o2//2).
    g2 = jnp.concatenate([p1[:, k:k + 8, :] for k in range(5)], axis=2)
    g2 = g2.reshape(bb * 8, 360)
    r2 = jnp.maximum(mm(g2, ws2_ref[...]) + b2_ref[...], 0.0)      # (bb*8, 128)

    # ---- maxpool 2x2 -> (bb, 4, 64), lanes = out_channel*4 + pooled column --
    r2 = r2.reshape(bb, 8, 128)
    r2 = jnp.maximum(r2[:, 0:7, :], r2[:, 1:8, :])                 # adjacent-row max
    p2 = jnp.concatenate([r2[:, 0:1, :], r2[:, 2:3, :],
                          r2[:, 4:5, :], r2[:, 6:7, :]], axis=1)   # rows 0,2,4,6
    p2 = jnp.maximum(p2[:, :, 0:64], p2[:, :, 64:128])             # (bb, 4, 64)

    # ---- flatten (fc1 rows pre-permuted to this order) + MLP ----------------
    feat = jnp.concatenate([p2[:, a:a + 1, :] for a in range(4)], axis=2)
    feat = feat.reshape(bb, 256)                                   # q1*64 + ch*4 + q2
    h = jnp.maximum(mm(feat, fc1w_ref[...]) + fc1b_ref[...], 0.0)
    h = jnp.maximum(mm(h, fc2w_ref[...]) + fc2b_ref[...], 0.0)
    o_ref[...] = mm(h, fc3w_ref[...]) + fc3b_ref[...]              # (bb, 10)


# ----------------------------------------------------------------------------
# One-time weight/constant re-arrangement (outside the per-call path)
# ----------------------------------------------------------------------------
def prepare_params(params):
    f32 = jnp.float32

    # -- column half of upsample + pad + 3x3 stencil as two (14, 28) matrices --
    j = np.arange(14)[:, None]
    q = np.arange(30)[None, :]
    rc = ((q == 2 * j + 1) | (q == 2 * j + 2)).astype(np.float32)   # upsample + pad
    rcbox = rc[:, 0:28] + rc[:, 1:29] + rc[:, 2:30]                 # horizontal 3-box
    rcmid = rc[:, 1:29]                                             # center tap
    rcmix = jnp.asarray((2.0 / 32.0) * rcbox + (3.0 / 4.0 - 1.0 / 32.0) * rcmid, f32)
    rcb32 = jnp.asarray(rcbox / 32.0, f32)

    # -- conv1 as one banded (140, 144) matrix; cols = (i2 parity, ch, i2//2) --
    w1 = params["conv1_w"].astype(f32)[:, 0]                        # (6, 5, 5)
    kh = np.arange(5)[:, None, None, None, None]
    s = np.arange(28)[None, :, None, None, None]
    par = np.arange(2)[None, None, :, None, None]
    ch = np.arange(6)[None, None, None, :, None]
    p = np.arange(12)[None, None, None, None, :]
    kw = s - (2 * p + par)
    ws1 = jnp.where((kw >= 0) & (kw < 5),
                    w1[ch, kh, np.clip(kw, 0, 4)], 0.0).reshape(140, 144)
    b1 = jnp.broadcast_to(params["conv1_b"].astype(f32)[None, :, None],
                          (2, 6, 12)).reshape(1, 144)

    # -- conv2 as one banded (360, 128) matrix; cols = (o2 parity, ch, o2//2) --
    w2 = params["conv2_w"].astype(f32)                              # (16, 6, 5, 5)
    kh = np.arange(5)[:, None, None, None, None, None]
    ci = np.arange(6)[None, :, None, None, None, None]
    s = np.arange(12)[None, None, :, None, None, None]
    par = np.arange(2)[None, None, None, :, None, None]
    co = np.arange(16)[None, None, None, None, :, None]
    p = np.arange(4)[None, None, None, None, None, :]
    kw = s - (2 * p + par)
    ws2 = jnp.where((kw >= 0) & (kw < 5),
                    w2[co, ci, kh, np.clip(kw, 0, 4)], 0.0).reshape(360, 128)
    b2 = jnp.broadcast_to(params["conv2_b"].astype(f32)[None, :, None],
                          (2, 16, 4)).reshape(1, 128)

    # -- fc1 with the NCHW flatten permutation folded into its rows -----------
    q1 = np.arange(4)[:, None, None]
    co = np.arange(16)[None, :, None]
    q2 = np.arange(4)[None, None, :]
    perm = (co * 16 + q1 * 4 + q2).reshape(256)     # new (q1,ch,q2) -> torch c*16+h*4+w
    fc1_w = params["fc1_w"].astype(f32)[perm, :]

    return {
        "rcmix": rcmix, "rcb32": rcb32,
        "ws1": ws1, "b1": b1, "ws2": ws2, "b2": b2,
        "fc1_w": fc1_w, "fc1_b": params["fc1_b"].astype(f32).reshape(1, 120),
        "fc2_w": params["fc2_w"].astype(f32),
        "fc2_b": params["fc2_b"].astype(f32).reshape(1, 84),
        "fc3_w": params["fc3_w"].astype(f32),
        "fc3_b": params["fc3_b"].astype(f32).reshape(1, 10),
    }


# ----------------------------------------------------------------------------
# Forward pass: one pallas_call with a batch-parallel grid
# ----------------------------------------------------------------------------
def rnumber_forward(x, prepped, block_b=32):
    B = x.shape[0]
    x3 = x.reshape(B, 14, 14).astype(jnp.float32)

    if B <= block_b:
        bb, bp = B, B
    else:
        bb = max(8, (block_b // 8) * 8)          # keep sub-blocks (8,128)-friendly
        bp = ((B + bb - 1) // bb) * bb
        if bp != B:
            x3 = jnp.concatenate(
                [x3, jnp.zeros((bp - B, 14, 14), jnp.float32)], axis=0)
    x_rows = x3.reshape(bp * 14, 14)             # rows = (batch, input row)

    wspec = lambda shape: pl.BlockSpec(shape, lambda b: (0, 0))

    out = pl.pallas_call(
        _rnumber_kernel,
        out_shape=jax.ShapeDtypeStruct((bp, 10), jnp.float32),
        grid=(bp // bb,),
        in_specs=[
            pl.BlockSpec((bb * 14, 14), lambda b: (b, 0)),          # x
            wspec((14, 28)), wspec((14, 28)),                       # stencil constants
            wspec((140, 144)), wspec((1, 144)),                     # conv1
            wspec((360, 128)), wspec((1, 128)),                     # conv2
            wspec((256, 120)), wspec((1, 120)),                     # fc1
            wspec((120, 84)), wspec((1, 84)),                       # fc2
            wspec((84, 10)), wspec((1, 10)),                        # fc3
        ],
        out_specs=pl.BlockSpec((bb, 10), lambda b: (b, 0)),
        compiler_params=pltpu.CompilerParams(
            dimension_semantics=("parallel",),
            vmem_limit_bytes=32 * 1024 * 1024,
        ),
    )(x_rows, prepped["rcmix"], prepped["rcb32"],
      prepped["ws1"], prepped["b1"], prepped["ws2"], prepped["b2"],
      prepped["fc1_w"], prepped["fc1_b"],
      prepped["fc2_w"], prepped["fc2_b"],
      prepped["fc3_w"], prepped["fc3_b"])
    return out[:B]


# ----------------------------------------------------------------------------
# Deterministic parameter init + run
# ----------------------------------------------------------------------------
def _uinit(key, shape, fan_in):
    bound = 1.0 / math.sqrt(fan_in)
    return jax.random.uniform(key, shape, jnp.float32, -bound, bound)


if __name__ == "__main__":
    key = jax.random.PRNGKey(0)
    kx, *kp = jax.random.split(key, 11)

    params = {
        "conv1_w": _uinit(kp[0], (6, 1, 5, 5), 25.0),
        "conv1_b": _uinit(kp[1], (6,), 25.0),
        "conv2_w": _uinit(kp[2], (16, 6, 5, 5), 150.0),
        "conv2_b": _uinit(kp[3], (16,), 150.0),
        # Linear weights stored as (in, out); equivalent to PyTorch (out, in) transposed.
        "fc1_w": _uinit(kp[4], (256, 120), 256.0),
        "fc1_b": _uinit(kp[5], (120,), 256.0),
        "fc2_w": _uinit(kp[6], (120, 84), 120.0),
        "fc2_b": _uinit(kp[7], (84,), 120.0),
        "fc3_w": _uinit(kp[8], (84, 10), 84.0),
        "fc3_b": _uinit(kp[9], (10,), 84.0),
    }
    prepped = prepare_params(params)

    # Input (B, 1, 14, 14): 2x upsample -> 28x28, LeNet trunk -> 16*4*4 = 256 feats.
    x = jax.random.uniform(kx, (2, 1, 14, 14), jnp.float32)

    out = jax.jit(lambda xx: rnumber_forward(xx, prepped))(x)
    out = jax.block_until_ready(out)
    assert out.shape == (2, 10) and out.dtype == jnp.float32
    print("KERNEL_OK")
</pallas_src>

<mosaic_0001>
module attributes {stable_mosaic.version = 11 : i64} {
  func.func @_rnumber_kernel(%arg0: i32, %arg1: memref<28x14xf32, #tpu.memory_space<vmem>>, %arg2: memref<14x28xf32, #tpu.memory_space<vmem>>, %arg3: memref<14x28xf32, #tpu.memory_space<vmem>>, %arg4: memref<140x144xf32, #tpu.memory_space<vmem>>, %arg5: memref<1x144xf32, #tpu.memory_space<vmem>>, %arg6: memref<360x128xf32, #tpu.memory_space<vmem>>, %arg7: memref<1x128xf32, #tpu.memory_space<vmem>>, %arg8: memref<256x120xf32, #tpu.memory_space<vmem>>, %arg9: memref<1x120xf32, #tpu.memory_space<vmem>>, %arg10: memref<120x84xf32, #tpu.memory_space<vmem>>, %arg11: memref<1x84xf32, #tpu.memory_space<vmem>>, %arg12: memref<84x10xf32, #tpu.memory_space<vmem>>, %arg13: memref<1x10xf32, #tpu.memory_space<vmem>>, %arg14: memref<2x10xf32, #tpu.memory_space<vmem>>) attributes {dimension_semantics = [#tpu.dimension_semantics<parallel>], iteration_bounds = array<i64: 1>, scalar_prefetch = 0 : i64, scratch_operands = 0 : i64, tpu.core_type = #tpu.core_type<tc>, window_params = [{transform_indices = @transform_0, window_bounds = array<i64: 28, 14>}, {pipeline_mode = #tpu.pipeline_mode<synchronous>, transform_indices = @transform_1, window_bounds = array<i64: 14, 28>}, {pipeline_mode = #tpu.pipeline_mode<synchronous>, transform_indices = @transform_2, window_bounds = array<i64: 14, 28>}, {pipeline_mode = #tpu.pipeline_mode<synchronous>, transform_indices = @transform_3, window_bounds = array<i64: 140, 144>}, {pipeline_mode = #tpu.pipeline_mode<synchronous>, transform_indices = @transform_4, window_bounds = array<i64: 1, 144>}, {pipeline_mode = #tpu.pipeline_mode<synchronous>, transform_indices = @transform_5, window_bounds = array<i64: 360, 128>}, {pipeline_mode = #tpu.pipeline_mode<synchronous>, transform_indices = @transform_6, window_bounds = array<i64: 1, 128>}, {pipeline_mode = #tpu.pipeline_mode<synchronous>, transform_indices = @transform_7, window_bounds = array<i64: 256, 120>}, {pipeline_mode = #tpu.pipeline_mode<synchronous>, transform_indices = @transform_8, window_bounds = array<i64: 1, 120>}, {pipeline_mode = #tpu.pipeline_mode<synchronous>, transform_indices = @transform_9, window_bounds = array<i64: 120, 84>}, {pipeline_mode = #tpu.pipeline_mode<synchronous>, transform_indices = @transform_10, window_bounds = array<i64: 1, 84>}, {pipeline_mode = #tpu.pipeline_mode<synchronous>, transform_indices = @transform_11, window_bounds = array<i64: 84, 10>}, {pipeline_mode = #tpu.pipeline_mode<synchronous>, transform_indices = @transform_12, window_bounds = array<i64: 1, 10>}, {transform_indices = @transform_13, window_bounds = array<i64: 2, 10>}]} {
    %c0 = arith.constant 0 : index
    %c0_0 = arith.constant 0 : index
    %0 = vector.load %arg1[%c0, %c0_0] : memref<28x14xf32, #tpu.memory_space<vmem>>, vector<28x14xf32>
    %c0_1 = arith.constant 0 : index
    %c0_2 = arith.constant 0 : index
    %1 = vector.load %arg2[%c0_1, %c0_2] : memref<14x28xf32, #tpu.memory_space<vmem>>, vector<14x28xf32>
    %cst = arith.constant dense<0.000000e+00> : vector<28x28xf32>
    %2 = tpu.matmul %0, %1, %cst {dimension_numbers = #tpu.dot_dimension_numbers<[1], [0], [0], [1], [0, 0, 1, 1], [], []>} : vector<28x14xf32>, vector<14x28xf32>, vector<28x28xf32> -> vector<28x28xf32>
    %3 = vector.shape_cast %2 : vector<28x28xf32> to vector<2x14x28xf32>
    %c0_3 = arith.constant 0 : index
    %c0_4 = arith.constant 0 : index
    %4 = vector.load %arg3[%c0_3, %c0_4] : memref<14x28xf32, #tpu.memory_space<vmem>>, vector<14x28xf32>
    %cst_5 = arith.constant dense<0.000000e+00> : vector<28x28xf32>
    %5 = tpu.matmul %0, %4, %cst_5 {dimension_numbers = #tpu.dot_dimension_numbers<[1], [0], [0], [1], [0, 0, 1, 1], [], []>} : vector<28x14xf32>, vector<14x28xf32>, vector<28x28xf32> -> vector<28x28xf32>
    %6 = vector.shape_cast %5 : vector<28x28xf32> to vector<2x14x28xf32>
    %cst_6 = arith.constant 0.000000e+00 : f32
    %7 = vector.broadcast %cst_6 : f32 to vector<2x1x28xf32>
    %8 = vector.extract_strided_slice %6 {offsets = [0, 0, 0], sizes = [2, 13, 28], strides = [1, 1, 1]} : vector<2x14x28xf32> to vector<2x13x28xf32>
    %9 = tpu.concatenate %7, %8 in 1 : vector<2x1x28xf32>, vector<2x13x28xf32> -> vector<2x14x28xf32>
    %10 = vector.extract_strided_slice %6 {offsets = [0, 1, 0], sizes = [2, 13, 28], strides = [1, 1, 1]} : vector<2x14x28xf32> to vector<2x13x28xf32>
    %11 = tpu.concatenate %10, %7 in 1 : vector<2x13x28xf32>, vector<2x1x28xf32> -> vector<2x14x28xf32>
    %12 = arith.addf %3, %9 : vector<2x14x28xf32>
    %13 = arith.addf %3, %11 : vector<2x14x28xf32>
    %cst_7 = arith.constant 0.333333343 : f32
    %14 = vector.broadcast %cst_7 : f32 to vector<2x14x28xf32>
    %15 = arith.cmpf ogt, %12, %14 : vector<2x14x28xf32>
    %cst_8 = arith.constant 0.000000e+00 : f32
    %16 = vector.broadcast %cst_8 : f32 to vector<2x14x28xf32>
    %17 = arith.select %15, %12, %16 : vector<2x14x28xi1>, vector<2x14x28xf32>
    %cst_9 = arith.constant 0.333333343 : f32
    %18 = vector.broadcast %cst_9 : f32 to vector<2x14x28xf32>
    %19 = arith.cmpf ogt, %13, %18 : vector<2x14x28xf32>
    %cst_10 = arith.constant 0.000000e+00 : f32
    %20 = vector.broadcast %cst_10 : f32 to vector<2x14x28xf32>
    %21 = arith.select %19, %13, %20 : vector<2x14x28xi1>, vector<2x14x28xf32>
    %22 = vector.extract_strided_slice %17 {offsets = [0, 0, 0], sizes = [2, 12, 28], strides = [1, 1, 1]} : vector<2x14x28xf32> to vector<2x12x28xf32>
    %23 = vector.extract_strided_slice %17 {offsets = [0, 1, 0], sizes = [2, 12, 28], strides = [1, 1, 1]} : vector<2x14x28xf32> to vector<2x12x28xf32>
    %24 = vector.extract_strided_slice %17 {offsets = [0, 2, 0], sizes = [2, 12, 28], strides = [1, 1, 1]} : vector<2x14x28xf32> to vector<2x12x28xf32>
    %25 = vector.extract_strided_slice %21 {offsets = [0, 0, 0], sizes = [2, 12, 28], strides = [1, 1, 1]} : vector<2x14x28xf32> to vector<2x12x28xf32>
    %26 = vector.extract_strided_slice %21 {offsets = [0, 1, 0], sizes = [2, 12, 28], strides = [1, 1, 1]} : vector<2x14x28xf32> to vector<2x12x28xf32>
    %27 = vector.extract_strided_slice %21 {offsets = [0, 2, 0], sizes = [2, 12, 28], strides = [1, 1, 1]} : vector<2x14x28xf32> to vector<2x12x28xf32>
    %28 = tpu.concatenate %22, %25, %23, %26, %24 in 2 : vector<2x12x28xf32>, vector<2x12x28xf32>, vector<2x12x28xf32>, vector<2x12x28xf32>, vector<2x12x28xf32> -> vector<2x12x140xf32>
    %29 = tpu.concatenate %25, %23, %26, %24, %27 in 2 : vector<2x12x28xf32>, vector<2x12x28xf32>, vector<2x12x28xf32>, vector<2x12x28xf32>, vector<2x12x28xf32> -> vector<2x12x140xf32>
    %30 = tpu.concatenate %28, %29 in 1 : vector<2x12x140xf32>, vector<2x12x140xf32> -> vector<2x24x140xf32>
    %31 = vector.shape_cast %30 : vector<2x24x140xf32> to vector<48x140xf32>
    %c0_11 = arith.constant 0 : index
    %c0_12 = arith.constant 0 : index
    %32 = vector.load %arg4[%c0_11, %c0_12] : memref<140x144xf32, #tpu.memory_space<vmem>>, vector<140x144xf32>
    %cst_13 = arith.constant dense<0.000000e+00> : vector<48x144xf32>
    %33 = tpu.matmul %31, %32, %cst_13 {dimension_numbers = #tpu.dot_dimension_numbers<[1], [0], [0], [1], [0, 0, 1, 1], [], []>} : vector<48x140xf32>, vector<140x144xf32>, vector<48x144xf32> -> vector<48x144xf32>
    %c0_14 = arith.constant 0 : index
    %c0_15 = arith.constant 0 : index
    %34 = vector.load %arg5[%c0_14, %c0_15] : memref<1x144xf32, #tpu.memory_space<vmem>>, vector<1x144xf32>
    %35 = vector.broadcast %34 : vector<1x144xf32> to vector<48x144xf32>
    %36 = arith.addf %33, %35 : vector<48x144xf32>
    %cst_16 = arith.constant 0.000000e+00 : f32
    %37 = vector.broadcast %cst_16 : f32 to vector<48x144xf32>
    %38 = arith.maximumf %36, %37 : vector<48x144xf32>
    %39 = vector.extract_strided_slice %38 {offsets = [0, 0], sizes = [48, 72], strides = [1, 1]} : vector<48x144xf32> to vector<48x72xf32>
    %40 = vector.extract_strided_slice %38 {offsets = [0, 72], sizes = [48, 72], strides = [1, 1]} : vector<48x144xf32> to vector<48x72xf32>
    %41 = arith.maximumf %39, %40 : vector<48x72xf32>
    %42 = vector.shape_cast %41 : vector<48x72xf32> to vector<2x24x72xf32>
    %43 = vector.extract_strided_slice %42 {offsets = [0, 0, 0], sizes = [2, 12, 72], strides = [1, 1, 1]} : vector<2x24x72xf32> to vector<2x12x72xf32>
    %44 = vector.extract_strided_slice %42 {offsets = [0, 12, 0], sizes = [2, 12, 72], strides = [1, 1, 1]} : vector<2x24x72xf32> to vector<2x12x72xf32>
    %45 = arith.maximumf %43, %44 : vector<2x12x72xf32>
    %46 = vector.extract_strided_slice %45 {offsets = [0, 0, 0], sizes = [2, 8, 72], strides = [1, 1, 1]} : vector<2x12x72xf32> to vector<2x8x72xf32>
    %47 = vector.extract_strided_slice %45 {offsets = [0, 1, 0], sizes = [2, 8, 72], strides = [1, 1, 1]} : vector<2x12x72xf32> to vector<2x8x72xf32>
    %48 = vector.extract_strided_slice %45 {offsets = [0, 2, 0], sizes = [2, 8, 72], strides = [1, 1, 1]} : vector<2x12x72xf32> to vector<2x8x72xf32>
    %49 = vector.extract_strided_slice %45 {offsets = [0, 3, 0], sizes = [2, 8, 72], strides = [1, 1, 1]} : vector<2x12x72xf32> to vector<2x8x72xf32>
    %50 = vector.extract_strided_slice %45 {offsets = [0, 4, 0], sizes = [2, 8, 72], strides = [1, 1, 1]} : vector<2x12x72xf32> to vector<2x8x72xf32>
    %51 = tpu.concatenate %46, %47, %48, %49, %50 in 2 : vector<2x8x72xf32>, vector<2x8x72xf32>, vector<2x8x72xf32>, vector<2x8x72xf32>, vector<2x8x72xf32> -> vector<2x8x360xf32>
    %52 = vector.shape_cast %51 : vector<2x8x360xf32> to vector<16x360xf32>
    %c0_17 = arith.constant 0 : index
    %c0_18 = arith.constant 0 : index
    %53 = vector.load %arg6[%c0_17, %c0_18] : memref<360x128xf32, #tpu.memory_space<vmem>>, vector<360x128xf32>
    %cst_19 = arith.constant dense<0.000000e+00> : vector<16x128xf32>
    %54 = tpu.matmul %52, %53, %cst_19 {dimension_numbers = #tpu.dot_dimension_numbers<[1], [0], [0], [1], [0, 0, 1, 1], [], []>} : vector<16x360xf32>, vector<360x128xf32>, vector<16x128xf32> -> vector<16x128xf32>
    %c0_20 = arith.constant 0 : index
    %c0_21 = arith.constant 0 : index
    %55 = vector.load %arg7[%c0_20, %c0_21] : memref<1x128xf32, #tpu.memory_space<vmem>>, vector<1x128xf32>
    %56 = vector.broadcast %55 : vector<1x128xf32> to vector<16x128xf32>
    %57 = arith.addf %54, %56 : vector<16x128xf32>
    %cst_22 = arith.constant 0.000000e+00 : f32
    %58 = vector.broadcast %cst_22 : f32 to vector<16x128xf32>
    %59 = arith.maximumf %57, %58 : vector<16x128xf32>
    %60 = vector.shape_cast %59 : vector<16x128xf32> to vector<2x8x128xf32>
    %61 = vector.extract_strided_slice %60 {offsets = [0, 0, 0], sizes = [2, 7, 128], strides = [1, 1, 1]} : vector<2x8x128xf32> to vector<2x7x128xf32>
    %62 = vector.extract_strided_slice %60 {offsets = [0, 1, 0], sizes = [2, 7, 128], strides = [1, 1, 1]} : vector<2x8x128xf32> to vector<2x7x128xf32>
    %63 = arith.maximumf %61, %62 : vector<2x7x128xf32>
    %64 = vector.extract_strided_slice %63 {offsets = [0, 0, 0], sizes = [2, 1, 128], strides = [1, 1, 1]} : vector<2x7x128xf32> to vector<2x1x128xf32>
    %65 = vector.extract_strided_slice %63 {offsets = [0, 2, 0], sizes = [2, 1, 128], strides = [1, 1, 1]} : vector<2x7x128xf32> to vector<2x1x128xf32>
    %66 = vector.extract_strided_slice %63 {offsets = [0, 4, 0], sizes = [2, 1, 128], strides = [1, 1, 1]} : vector<2x7x128xf32> to vector<2x1x128xf32>
    %67 = vector.extract_strided_slice %63 {offsets = [0, 6, 0], sizes = [2, 1, 128], strides = [1, 1, 1]} : vector<2x7x128xf32> to vector<2x1x128xf32>
    %68 = tpu.concatenate %64, %65, %66, %67 in 1 : vector<2x1x128xf32>, vector<2x1x128xf32>, vector<2x1x128xf32>, vector<2x1x128xf32> -> vector<2x4x128xf32>
    %69 = vector.extract_strided_slice %68 {offsets = [0, 0, 0], sizes = [2, 4, 64], strides = [1, 1, 1]} : vector<2x4x128xf32> to vector<2x4x64xf32>
    %70 = vector.extract_strided_slice %68 {offsets = [0, 0, 64], sizes = [2, 4, 64], strides = [1, 1, 1]} : vector<2x4x128xf32> to vector<2x4x64xf32>
    %71 = arith.maximumf %69, %70 : vector<2x4x64xf32>
    %72 = vector.extract_strided_slice %71 {offsets = [0, 0, 0], sizes = [2, 1, 64], strides = [1, 1, 1]} : vector<2x4x64xf32> to vector<2x1x64xf32>
    %73 = vector.extract_strided_slice %71 {offsets = [0, 1, 0], sizes = [2, 1, 64], strides = [1, 1, 1]} : vector<2x4x64xf32> to vector<2x1x64xf32>
    %74 = vector.extract_strided_slice %71 {offsets = [0, 2, 0], sizes = [2, 1, 64], strides = [1, 1, 1]} : vector<2x4x64xf32> to vector<2x1x64xf32>
    %75 = vector.extract_strided_slice %71 {offsets = [0, 3, 0], sizes = [2, 1, 64], strides = [1, 1, 1]} : vector<2x4x64xf32> to vector<2x1x64xf32>
    %76 = tpu.concatenate %72, %73, %74, %75 in 2 : vector<2x1x64xf32>, vector<2x1x64xf32>, vector<2x1x64xf32>, vector<2x1x64xf32> -> vector<2x1x256xf32>
    %77 = vector.shape_cast %76 : vector<2x1x256xf32> to vector<2x256xf32>
    %c0_23 = arith.constant 0 : index
    %c0_24 = arith.constant 0 : index
    %78 = vector.load %arg8[%c0_23, %c0_24] : memref<256x120xf32, #tpu.memory_space<vmem>>, vector<256x120xf32>
    %cst_25 = arith.constant dense<0.000000e+00> : vector<2x120xf32>
    %79 = tpu.matmul %77, %78, %cst_25 {dimension_numbers = #tpu.dot_dimension_numbers<[1], [0], [0], [1], [0, 0, 1, 1], [], []>} : vector<2x256xf32>, vector<256x120xf32>, vector<2x120xf32> -> vector<2x120xf32>
    %c0_26 = arith.constant 0 : index
    %c0_27 = arith.constant 0 : index
    %80 = vector.load %arg9[%c0_26, %c0_27] : memref<1x120xf32, #tpu.memory_space<vmem>>, vector<1x120xf32>
    %81 = vector.broadcast %80 : vector<1x120xf32> to vector<2x120xf32>
    %82 = arith.addf %79, %81 : vector<2x120xf32>
    %cst_28 = arith.constant 0.000000e+00 : f32
    %83 = vector.broadcast %cst_28 : f32 to vector<2x120xf32>
    %84 = arith.maximumf %82, %83 : vector<2x120xf32>
    %c0_29 = arith.constant 0 : index
    %c0_30 = arith.constant 0 : index
    %85 = vector.load %arg10[%c0_29, %c0_30] : memref<120x84xf32, #tpu.memory_space<vmem>>, vector<120x84xf32>
    %cst_31 = arith.constant dense<0.000000e+00> : vector<2x84xf32>
    %86 = tpu.matmul %84, %85, %cst_31 {dimension_numbers = #tpu.dot_dimension_numbers<[1], [0], [0], [1], [0, 0, 1, 1], [], []>} : vector<2x120xf32>, vector<120x84xf32>, vector<2x84xf32> -> vector<2x84xf32>
    %c0_32 = arith.constant 0 : index
    %c0_33 = arith.constant 0 : index
    %87 = vector.load %arg11[%c0_32, %c0_33] : memref<1x84xf32, #tpu.memory_space<vmem>>, vector<1x84xf32>
    %88 = vector.broadcast %87 : vector<1x84xf32> to vector<2x84xf32>
    %89 = arith.addf %86, %88 : vector<2x84xf32>
    %cst_34 = arith.constant 0.000000e+00 : f32
    %90 = vector.broadcast %cst_34 : f32 to vector<2x84xf32>
    %91 = arith.maximumf %89, %90 : vector<2x84xf32>
    %c0_35 = arith.constant 0 : index
    %c0_36 = arith.constant 0 : index
    %92 = vector.load %arg12[%c0_35, %c0_36] : memref<84x10xf32, #tpu.memory_space<vmem>>, vector<84x10xf32>
    %cst_37 = arith.constant dense<0.000000e+00> : vector<2x10xf32>
    %93 = tpu.matmul %91, %92, %cst_37 {dimension_numbers = #tpu.dot_dimension_numbers<[1], [0], [0], [1], [0, 0, 1, 1], [], []>} : vector<2x84xf32>, vector<84x10xf32>, vector<2x10xf32> -> vector<2x10xf32>
    %c0_38 = arith.constant 0 : index
    %c0_39 = arith.constant 0 : index
    %94 = vector.load %arg13[%c0_38, %c0_39] : memref<1x10xf32, #tpu.memory_space<vmem>>, vector<1x10xf32>
    %95 = vector.broadcast %94 : vector<1x10xf32> to vector<2x10xf32>
    %96 = arith.addf %93, %95 : vector<2x10xf32>
    %c0_40 = arith.constant 0 : index
    %c0_41 = arith.constant 0 : index
    %97 = vector.load %arg14[%c0_40, %c0_41] : memref<2x10xf32, #tpu.memory_space<vmem>>, vector<2x10xf32>
    tpu.vector_store %arg14[%c0_40, %c0_41], %96 {strides = array<i32>} : memref<2x10xf32, #tpu.memory_space<vmem>>, vector<2x10xf32>,
    return
  }
  func.func @transform_0(%arg0: i32) -> (i32, i32) {
    %c0_i32 = arith.constant 0 : i32
    %c0_i32_0 = arith.constant 0 : i32
    return %arg0, %c0_i32 : i32, i32
  }
  func.func @transform_1(%arg0: i32) -> (i32, i32) {
    %c0_i32 = arith.constant 0 : i32
    %c0_i32_0 = arith.constant 0 : i32
    %c0_i32_1 = arith.constant 0 : i32
    return %c0_i32, %c0_i32_0 : i32, i32
  }
  func.func @transform_2(%arg0: i32) -> (i32, i32) {
    %c0_i32 = arith.constant 0 : i32
    %c0_i32_0 = arith.constant 0 : i32
    %c0_i32_1 = arith.constant 0 : i32
    return %c0_i32, %c0_i32_0 : i32, i32
  }
  func.func @transform_3(%arg0: i32) -> (i32, i32) {
    %c0_i32 = arith.constant 0 : i32
    %c0_i32_0 = arith.constant 0 : i32
    %c0_i32_1 = arith.constant 0 : i32
    return %c0_i32, %c0_i32_0 : i32, i32
  }
  func.func @transform_4(%arg0: i32) -> (i32, i32) {
    %c0_i32 = arith.constant 0 : i32
    %c0_i32_0 = arith.constant 0 : i32
    %c0_i32_1 = arith.constant 0 : i32
    return %c0_i32, %c0_i32_0 : i32, i32
  }
  func.func @transform_5(%arg0: i32) -> (i32, i32) {
    %c0_i32 = arith.constant 0 : i32
    %c0_i32_0 = arith.constant 0 : i32
    %c0_i32_1 = arith.constant 0 : i32
    return %c0_i32, %c0_i32_0 : i32, i32
  }
  func.func @transform_6(%arg0: i32) -> (i32, i32) {
    %c0_i32 = arith.constant 0 : i32
    %c0_i32_0 = arith.constant 0 : i32
    %c0_i32_1 = arith.constant 0 : i32
    return %c0_i32, %c0_i32_0 : i32, i32
  }
  func.func @transform_7(%arg0: i32) -> (i32, i32) {
    %c0_i32 = arith.constant 0 : i32
    %c0_i32_0 = arith.constant 0 : i32
    %c0_i32_1 = arith.constant 0 : i32
    return %c0_i32, %c0_i32_0 : i32, i32
  }
  func.func @transform_8(%arg0: i32) -> (i32, i32) {
    %c0_i32 = arith.constant 0 : i32
    %c0_i32_0 = arith.constant 0 : i32
    %c0_i32_1 = arith.constant 0 : i32
    return %c0_i32, %c0_i32_0 : i32, i32
  }
  func.func @transform_9(%arg0: i32) -> (i32, i32) {
    %c0_i32 = arith.constant 0 : i32
    %c0_i32_0 = arith.constant 0 : i32
    %c0_i32_1 = arith.constant 0 : i32
    return %c0_i32, %c0_i32_0 : i32, i32
  }
  func.func @transform_10(%arg0: i32) -> (i32, i32) {
    %c0_i32 = arith.constant 0 : i32
    %c0_i32_0 = arith.constant 0 : i32
    %c0_i32_1 = arith.constant 0 : i32
    return %c0_i32, %c0_i32_0 : i32, i32
  }
  func.func @transform_11(%arg0: i32) -> (i32, i32) {
    %c0_i32 = arith.constant 0 : i32
    %c0_i32_0 = arith.constant 0 : i32
    %c0_i32_1 = arith.constant 0 : i32
    return %c0_i32, %c0_i32_0 : i32, i32
  }
  func.func @transform_12(%arg0: i32) -> (i32, i32) {
    %c0_i32 = arith.constant 0 : i32
    %c0_i32_0 = arith.constant 0 : i32
    %c0_i32_1 = arith.constant 0 : i32
    return %c0_i32, %c0_i32_0 : i32, i32
  }
  func.func @transform_13(%arg0: i32) -> (i32, i32) {
    %c0_i32 = arith.constant 0 : i32
    %c0_i32_0 = arith.constant 0 : i32
    return %arg0, %c0_i32 : i32, i32
  }
}

</mosaic_0001>

<bundles_post_ra>
// kernel: _lambda_.1
= control target key start
LH: loop header
LB: loop body
LE: loop exit
PB: predicated region body
PF: predicated region fallthrough
CT: control target
= control target key end

     0   :  { %18 = vsyncpa [#allocation3], 0  ;;  %s2690_s0 = inlined_call_operand.vmem [shape: f32[28,14], index: 0, kind: input, shape index: {}]   ;;  %s2691_s1 = inlined_call_operand.hbm [shape: f32[14,28], index: 1, kind: input, shape index: {}]   ;;  %s2692_s2 = inlined_call_operand.hbm [shape: f32[14,28], index: 2, kind: input, shape index: {}]   ;;  %s2693_s3 = inlined_call_operand.hbm [shape: f32[140,144], index: 3, kind: input, shape index: {}]   ;;  %s2694_s4 = inlined_call_operand.vmem [shape: f32[1,144], index: 4, kind: input, shape index: {}]   ;;  %s2695_s5 = inlined_call_operand.hbm [shape: f32[360,128], index: 5, kind: input, shape index: {}]   ;;  %s2696_s6 = inlined_call_operand.vmem [shape: f32[1,128], index: 6, kind: input, shape index: {}]   ;;  %s2697_s7 = inlined_call_operand.hbm [shape: f32[256,120], index: 7, kind: input, shape index: {}]   ;;  %s2698_s8 = inlined_call_operand.vmem [shape: f32[1,120], index: 8, kind: input, shape index: {}]   ;;  %s2699_s9 = inlined_call_operand.vmem [shape: f32[120,84], index: 9, kind: input, shape index: {}]   ;;  %s2700_s10 = inlined_call_operand.vmem [shape: f32[1,84], index: 10, kind: input, shape index: {}]   ;;  %s2701_s11 = inlined_call_operand.hbm [shape: f32[84,10], index: 11, kind: input, shape index: {}]   ;;  %s2702_s12 = inlined_call_operand.vmem [shape: f32[1,10], index: 12, kind: input, shape index: {}]   ;;  %s2703_s13 = inlined_call_operand.hbm [shape: f32[2,10], index: 13, kind: output, shape index: {}]  }
   0x1   :  { %19 = vsyncpa [#allocation6], 0 }
   0x2   :  { %20 = vsyncpa [#allocation9], 0 }
   0x3   :  { %21 = vsyncpa [#allocation12], 0 }
   0x4   :  { %22 = vsyncpa [#allocation4], 0  ;;  %s42_s27 = sshll.u32 %s2692_s2, 4  ;;  %s1947_s28 = smov [#allocation5]   ;;  %s43_s27 = int_to_ptr.hbm [resolvable:$true] %s42_s27 }
   0x5   :  { %s44_s29 = sshll.u32 %s1947_s28, 4  ;;  %s70_s15 = sshll.u32 %s2695_s5, 4  ;;  %s45_s29 = int_to_ptr.vmem [resolvable:$true] %s44_s29  ;;  %s71_s15 = int_to_ptr.hbm [resolvable:$true] %s70_s15 }
   0x6   :  { %s1948_s16 = smov 128   ;;  %s1949_s17 = smov 8  }
   0x7   :  { %50 = dma.hbm_to_vmem [thread:$0]  %s43_s27, 256, %s45_s29, [#allocation6], %s1948_s16, %s1948_s16, %s1949_s17  }
   0x8   :  { %s1950_s18 = smov [#allocation8]   ;;  %s29_s2 = sshll.u32 %s2691_s1, 4  ;;  %s30_s2 = int_to_ptr.hbm [resolvable:$true] %s29_s2 }
   0x9   :  { %s72_s19 = sshll.u32 %s1950_s18, 4  ;;  %s55_s23 = sshll.u32 %s2693_s3, 4  ;;  %s73_s19 = int_to_ptr.vmem [resolvable:$true] %s72_s19  ;;  %s56_s23 = int_to_ptr.hbm [resolvable:$true] %s55_s23 }
   0xa   :  { %78 = dma.hbm_to_vmem [thread:$0]  %s71_s15, 5760, %s73_s19, [#allocation9], %s1948_s16, %s1948_s16, %s1949_s17  }
   0xb   :  { %s1951_s24 = smov [#allocation2]   ;;  %s1952_s26 = smov [#allocation7]  }
   0xc   :  { %s31_s25 = sshll.u32 %s1951_s24, 4  ;;  %s57_s1 = sshll.u32 %s1952_s26, 4  ;;  %s32_s25 = int_to_ptr.vmem [resolvable:$true] %s31_s25  ;;  %s58_s1 = int_to_ptr.vmem [resolvable:$true] %s57_s1 }
   0xd   :  { %37 = dma.hbm_to_vmem [thread:$0]  %s30_s2, 256, %s32_s25, [#allocation3], %s1948_s16, %s1948_s16, %s1949_s17  }
   0xe   :  { %s1953_s27 = smov 256   ;;  %s1954_s28 = smov 16  }
   0xf   :  { %63 = dma.hbm_to_vmem [thread:$0]  %s56_s23, 4608, %s58_s1, [#allocation6], %s1953_s27, %s1953_s27, %s1954_s28  }
  0x10   :  { %s85_s14 = sshll.u32 %s2697_s7, 4  ;;  %s1955_s3 = smov [#allocation10]   ;;  %s86_s14 = int_to_ptr.hbm [resolvable:$true] %s85_s14 }
  0x11   :  { %s87_s15 = sshll.u32 %s1955_s3, 4  ;;  %s104_s20 = sshll.u32 %s2701_s11, 4  ;;  %s88_s15 = int_to_ptr.vmem [resolvable:$true] %s87_s15  ;;  %s105_s20 = int_to_ptr.hbm [resolvable:$true] %s104_s20 }
  0x12   :  { %93 = dma.hbm_to_vmem [thread:$0]  %s86_s14, 4096, %s88_s15, [#allocation9], %s1948_s16, %s1948_s16, %s1949_s17  }
  0x13   :  { %s1956_s21 = smov [#allocation11]  }
  0x14   :  { %s106_s2 = sshll.u32 %s1956_s21, 4  ;;  %s107_s2 = int_to_ptr.vmem [resolvable:$true] %s106_s2 }
  0x15   :  { %112 = dma.hbm_to_vmem [thread:$0]  %s105_s20, 1408, %s107_s2, [#allocation12], %s1948_s16, %s1948_s16, %s1949_s17  }
  0x16   :  { %1937 = dma.done.wait [#allocation3], 256  }
  0x17   :  { %1938 = vsyncadd [#allocation3], 4294967040 }
  0x18   :  { %1939 = dma.done.wait [#allocation6], 4864  }
  0x19   :  { %1940 = vsyncadd [#allocation6], 4294962432 }
  0x1a   :  { %1941 = dma.done.wait [#allocation9], 9856  }
  0x1b   :  { %1942 = vsyncadd [#allocation9], 4294957440 }
  0x1c   :  { %1943 = dma.done.wait [#allocation12], 1408  }
  0x1d   :  { %1944 = vsyncadd [#allocation12], 4294965888  ;;  %vm158_vm0 = vcmask 1045504   ;;  %v216_v0 = vld [vmem:[#allocation5 + $0x8] sm:$0x3f]  ;;  %v215_v1 = vld [vmem:[#allocation5] sm:$0xff] }
  0x1e   :  { %1652 = vmatpush.msk.msra.mxu1 %vm158_vm0, %v216_v0  ;;  %v139_v2 = vld [vmem:[%s2690_s0] sm:$0xff]  ;;  %vm145_vm1 = vcmask 113664   ;;  %v144_v3 = vld [vmem:[#allocation2 + $0x8] sm:$0x3f]  ;;  %v143_v4 = vld [vmem:[#allocation2] sm:$0xff]  ;;  %vm287_vm2 = vcmask 1040384  }
  0x1f   :  { %1647 = vmatpush.msk.msra.mxu0 %vm158_vm0, %v144_v3  ;;  %v140_v5 = vld [vmem:[%s2690_s0 + $0x8] sm:$0xff]  ;;  %v141_v6 = vld [vmem:[%s2690_s0 + $0x10] sm:$0xff]  ;;  %v142_v7 = vld [vmem:[%s2690_s0 + $0x18] sm:$0xf]  ;;  %vm324_vm9 = vcmask 1046528   ;;  %s1957_s0 = smov 112  }
  0x20   :  { %235 = vmatpush.msra.mxu1 %v215_v1  ;;  %s1958_s25 = smov 28   ;;  %s1959_s26 = smov 56  }
  0x21   :  { %1653 = vmatmul.msk.f32.vlgmr.msra.gmra.mxu1 %vm145_vm1, %v139_v2  ;;  %177 = vmatpush.msra.mxu0 %v143_v4  ;;  %s1960_s1 = smov 84   ;;  %s1962_s30 = smov 88  }
  0x22   :  { %1648 = vmatmul.msk.f32.vlgmr.msra.gmra.mxu0 %vm145_vm1, %v139_v2  ;;  %s1963_s14 = smov 32   ;;  %s1965_s16 = smov [#allocation13]  }
  0x23   :  { %s1632_s17 = sshll.u32 %s1965_s16, 4  ;;  %s1634_s23 = sshll.u32 %s2703_s13, 4  ;;  %s1633_s17 = int_to_ptr.vmem [resolvable:$true] %s1632_s17  ;;  %s1635_s23 = int_to_ptr.hbm [resolvable:$true] %s1634_s23 }
  0x29   :  { %1654 = vmatmul.msk.f32.gmra.mxu1 %vm145_vm1, %v140_v5 }
  0x2a   :  { %1649 = vmatmul.msk.f32.gmra.mxu0 %vm145_vm1, %v140_v5 }
  0x31   :  { %1655 = vmatmul.msk.f32.gmra.mxu1 %vm145_vm1, %v141_v6 }
  0x32   :  { %1650 = vmatmul.msk.f32.gmra.mxu0 %vm145_vm1, %v141_v6 }
  0x39   :  { %1656 = vmatmul.msk.f32.gmra.mxu1 %vm145_vm1, %v142_v7 }
  0x3a   :  { %1651 = vmatmul.msk.f32.gmra.mxu0 %vm145_vm1, %v142_v7 }
  0x9e   :  { %v237_v8 = vpop.f32.mrf.mxu1 }
  0x9f   :  { %v253_v9 = vrot.slane %v237_v8, 2  ;;  %v254_v10 = vrot.slane %v237_v8, 4  ;;  %v255_v11 = vrot.slane %v237_v8, 6  ;;  %263 = vst [vmem:[#allocation1] ss:$4 sm:$0xff] %v237_v8  ;;  %v2092_v24 = vpop.f32.mrf.mxu0 }
  0xa0   :  { %v195_v32 = vrot.slane %v2092_v24, 2  ;;  %v196_v33 = vrot.slane %v2092_v24, 4  ;;  %v197_v36 = vrot.slane %v2092_v24, 6 }
  0xa1   :  { %265 = vst [vmem:[#allocation1 + $0x1] ss:$4 sm:$0xff] %v253_v9 }
  0xa2   :  { %267 = vst [vmem:[#allocation1 + $0x2] ss:$4 sm:$0xff] %v254_v10 }
  0xa3   :  { %269 = vst [vmem:[#allocation1 + $0x3] ss:$4 sm:$0xff] %v255_v11 }
  0xa6   :  { %v240_v12 = vpop.f32.mrf.mxu1 }
  0xa7   :  { %v256_v13 = vrot.slane %v240_v12, 2  ;;  %v257_v14 = vrot.slane %v240_v12, 4  ;;  %v258_v15 = vrot.slane %v240_v12, 6  ;;  %271 = vst [vmem:[#allocation1 + $0x20] ss:$4 sm:$0xff] %v240_v12  ;;  %v2097_v30 = vpop.f32.mrf.mxu0 }
  0xa8   :  { %v198_v40 = vrot.slane %v2097_v30, 2  ;;  %v200_v52 = vrot.slane %v2097_v30, 6 }
  0xa9   :  { %275 = vst [vmem:[#allocation1 + $0x22] ss:$4 sm:$0xff] %v257_v14 }
  0xaa   :  { %v276_v16 = vld.sshfl [vmem:[#allocation1] sm:$0xff pattern:$0x73625140]  ;;  %273 = vst [vmem:[#allocation1 + $0x21] ss:$4 sm:$0xff] %v256_v13 }
  0xab   :  { %278 = vst [vmem:[#allocation1] ss:$4 sm:$0xff] %v258_v15  ;;  %v288_v26 = vrot.slane %v276_v16, 7 }
  0xad   :  { %v298_v28 = vsel %vm287_vm2, 0.0, %v288_v26 }
  0xae   :  { %v243_v17 = vpop.f32.mrf.mxu1  ;;  %v340_v34 = vrot.slane %v298_v28, 2  ;;  %v341_v35 = vrot.slane %v298_v28, 4  ;;  %v342_v37 = vrot.slane %v298_v28, 6  ;;  %v360_v39 = vadd.f32 %v298_v28, %v2092_v24 }
  0xaf   :  { %v259_v18 = vrot.slane %v243_v17, 2  ;;  %v260_v19 = vrot.slane %v243_v17, 4  ;;  %279 = vst [vmem:[#allocation1 + $0x1] ss:$4 sm:$0xff] %v243_v17  ;;  %v261_v20 = vrot.slane %v243_v17, 6  ;;  %v2124_v50 = vpop.f32.mrf.mxu0 }
  0xb0   :  { %v361_v41 = vadd.f32 %v340_v34, %v195_v32  ;;  %v362_v42 = vadd.f32 %v341_v35, %v196_v33  ;;  %v363_v46 = vadd.f32 %v342_v37, %v197_v36  ;;  %vm410_vm3 = vcmp.gt.f32.partialorder %v360_v39, 0.33333334 }
  0xb1   :  { %v277_v21 = vld.sshfl [vmem:[#allocation1 + $0x20] sm:$0xff pattern:$0x73625140]  ;;  %280 = vst [vmem:[#allocation1 + $0x2] ss:$4 sm:$0xff] %v259_v18  ;;  %v2126_v51 = vsel %vm410_vm3, %v360_v39, 0.0 }
  0xb2   :  { %281 = vst [vmem:[#allocation1 + $0x3] ss:$4 sm:$0xff] %v260_v19  ;;  %v289_v29 = vrot.slane %v277_v21, 7  ;;  %vm411_vm4 = vcmp.gt.f32.partialorder %v361_v41, 0.33333334  ;;  %v201_v58 = vrot.slane %v2124_v50, 2 }
  0xb3   :  { %282 = vst [vmem:[#allocation1 + $0x20] ss:$4 sm:$0xff] %v261_v20  ;;  %vm412_vm5 = vcmp.gt.f32.partialorder %v362_v42, 0.33333334  ;;  %vm413_vm6 = vcmp.gt.f32.partialorder %v363_v46, 0.33333334 }
  0xb4   :  { %v2105_v38 = vsel %vm287_vm2, %v288_v26, %v289_v29  ;;  %v2131_v55 = vsel %vm411_vm4, %v361_v41, 0.0  ;;  %v2133_v56 = vsel %vm412_vm5, %v362_v42, 0.0  ;;  %v2138_v60 = vsel %vm413_vm6, %v363_v46, 0.0 }
  0xb5   :  { %v343_v44 = vrot.slane %v2105_v38, 2  ;;  %v364_v47 = vadd.f32 %v2105_v38, %v2097_v30  ;;  %v202_v62 = vrot.slane %v2124_v50, 4  ;;  %v203_v4 = vrot.slane %v2124_v50, 6 }
  0xb6   :  { %v246_v22 = vpop.f32.mrf.mxu1  ;;  %vm335_vm3 = vcmask 1044480  }
  0xb7   :  { %v262_v23 = vrot.slane %v246_v22, 2  ;;  %283 = vst [vmem:[#allocation1 + $0x21] ss:$4 sm:$0xff] %v246_v22  ;;  %v365_v49 = vadd.f32 %v343_v44, %v198_v40  ;;  %vm414_vm7 = vcmp.gt.f32.partialorder %v364_v47, 0.33333334 }
  0xb8   :  { %v2141_v61 = vsel %vm414_vm7, %v364_v47, 0.0 }
  0xb9   :  { %284 = vst [vmem:[#allocation1 + $0x22] ss:$4 sm:$0xff] %v262_v23  ;;  %v2094_v25 = vld.sshfl [vmem:[#allocation1] sm:$0xff pattern:$0x73625140] }
  0xba   :  { %300 = vst [vmem:[#allocation1] ss:$4 sm:$0xff] %v237_v8  ;;  %v291_v43 = vrot.slane %v2094_v25, 7  ;;  %vm415_vm8 = vcmp.gt.f32.partialorder %v365_v49, 0.33333334 }
  0xbb   :  { %302 = vst [vmem:[#allocation1 + $0x1] ss:$4 sm:$0xff] %v253_v9  ;;  %v2152_v3 = vsel %vm415_vm8, %v365_v49, 0.0 }
  0xbc   :  { %304 = vst [vmem:[#allocation1 + $0x2] ss:$4 sm:$0xff] %v254_v10  ;;  %v299_v48 = vsel %vm287_vm2, 0.0, %v291_v43 }
  0xbd   :  { %306 = vst [vmem:[#allocation1 + $0x3] ss:$4 sm:$0xff] %v255_v11  ;;  %v345_v57 = vrot.slane %v299_v48, 2  ;;  %v346_v59 = vrot.slane %v299_v48, 4  ;;  %v367_v63 = vadd.f32 %v299_v48, %v200_v52  ;;  %v347_v2 = vrot.slane %v299_v48, 6  ;;  %v2165_v11 = vpop.f32.mrf.mxu0 }
  0xbf   :  { %v368_v5 = vadd.f32 %v345_v57, %v2124_v50  ;;  %v369_v7 = vadd.f32 %v346_v59, %v201_v58  ;;  %vm417_vm10 = vcmp.gt.f32.partialorder %v367_v63, 0.33333334  ;;  %v370_v10 = vadd.f32 %v347_v2, %v202_v62 }
  0xc0   :  { %v286_v27 = vld.sshfl [vmem:[#allocation1 + $0x20] sm:$0xff pattern:$0x73625140]  ;;  %v2174_v16 = vsel %vm417_vm10, %v367_v63, 0.0 }
  0xc1   :  { %308 = vst [vmem:[#allocation1 + $0x20] ss:$4 sm:$0xff] %v240_v12  ;;  %v292_v54 = vrot.slane %v286_v27, 7  ;;  %vm418_vm11 = vcmp.gt.f32.partialorder %v368_v5, 0.33333334 }
  0xc2   :  { %310 = vst [vmem:[#allocation1 + $0x21] ss:$4 sm:$0xff] %v256_v13  ;;  %vm419_vm12 = vcmp.gt.f32.partialorder %v369_v7, 0.33333334  ;;  %vm420_vm13 = vcmp.gt.f32.partialorder %v370_v10, 0.33333334 }
  0xc3   :  { %312 = vst [vmem:[#allocation1 + $0x22] ss:$4 sm:$0xff] %v257_v14  ;;  %v2150_v1 = vsel %vm287_vm2, %v291_v43, %v292_v54 }
  0xc4   :  { %v2099_v31 = vld.sshfl [vmem:[#allocation1] sm:$0xff pattern:$0x73625140]  ;;  %v348_v8 = vrot.slane %v2150_v1, 2  ;;  %v371_v12 = vadd.f32 %v2150_v1, %v203_v4 }
  0xc5   :  { %315 = vst [vmem:[#allocation1] ss:$4 sm:$0xff] %v258_v15  ;;  %v325_v9 = vrot.slane %v2099_v31, 1 }
  0xc6   :  { %316 = vst [vmem:[#allocation1 + $0x1] ss:$4 sm:$0xff] %v243_v17  ;;  %v372_v13 = vadd.f32 %v348_v8, %v2165_v11  ;;  %v2177_v17 = vsel %vm418_vm11, %v368_v5, 0.0  ;;  %vm421_vm14 = vcmp.gt.f32.partialorder %v371_v12, 0.33333334 }
  0xc7   :  { %317 = vst [vmem:[#allocation1 + $0x2] ss:$4 sm:$0xff] %v259_v18  ;;  %v2188_v26 = vsel %vm421_vm14, %v371_v12, 0.0  ;;  %v344_v12 = vrot.slane %v2105_v38, 4  ;;  %v349_v38 = vrot.slane %v2150_v1, 4 }
  0xc8   :  { %318 = vst [vmem:[#allocation1 + $0x3] ss:$4 sm:$0xff] %v260_v19  ;;  %v2179_v19 = vsel %vm419_vm12, %v369_v7, 0.0  ;;  %vm422_vm15 = vcmp.gt.f32.partialorder %v372_v13, 0.33333334 }
  0xc9   :  { %v2195_v29 = vsel %vm422_vm15, %v372_v13, 0.0 }
  0xca   :  { %v2115_v45 = vld.sshfl [vmem:[#allocation1 + $0x20] sm:$0xff pattern:$0x73625140] }
  0xcb   :  { %319 = vst [vmem:[#allocation1 + $0x20] ss:$4 sm:$0xff] %v261_v20  ;;  %v326_v6 = vrot.slane %v2115_v45, 1 }
  0xcc   :  { %320 = vst [vmem:[#allocation1 + $0x21] ss:$4 sm:$0xff] %v246_v22 }
  0xcd   :  { %321 = vst [vmem:[#allocation1 + $0x22] ss:$4 sm:$0xff] %v262_v23  ;;  %v327_v14 = vsel %vm324_vm9, %v325_v9, %v326_v6  ;;  %v2184_v23 = vsel %vm420_vm13, %v370_v10, 0.0  ;;  %v2212_v42 = vsel %vm335_vm3, %v326_v6, 0.0 }
  0xce   :  { %v376_v18 = vrot.slane %v327_v14, 2  ;;  %v377_v21 = vrot.slane %v327_v14, 4  ;;  %v378_v22 = vrot.slane %v327_v14, 6  ;;  %v396_v25 = vadd.f32 %v327_v14, %v2092_v24 }
  0xcf   :  { %v2129_v53 = vld.sshfl [vmem:[#allocation1] sm:$0xff pattern:$0x73625140]  ;;  %v379_v46 = vrot.slane %v2212_v42, 2  ;;  %v380_v1 = vrot.slane %v2212_v42, 4 }
  0xd0   :  { %478 = vst [vmem:[#allocation1] ss:$4 sm:$0xff] %v2126_v51  ;;  %v397_v28 = vadd.f32 %v376_v18, %v195_v32  ;;  %v398_v31 = vadd.f32 %v377_v21, %v196_v33  ;;  %v328_v34 = vrot.slane %v2129_v53, 1  ;;  %v399_v35 = vadd.f32 %v378_v22, %v197_v36 }
  0xd1   :  { %480 = vst [vmem:[#allocation1 + $0x1] ss:$4 sm:$0xff] %v2131_v55  ;;  %vm438_vm1 = vcmp.gt.f32.partialorder %v396_v25, 0.33333334  ;;  %v400_v53 = vadd.f32 %v2212_v42, %v2097_v30  ;;  %v401_v54 = vadd.f32 %v379_v46, %v198_v40 }
  0xd2   :  { %482 = vst [vmem:[#allocation1 + $0x2] ss:$4 sm:$0xff] %v2133_v56  ;;  %vm439_vm4 = vcmp.gt.f32.partialorder %v397_v28, 0.33333334  ;;  %vm440_vm5 = vcmp.gt.f32.partialorder %v398_v31, 0.33333334 }
  0xd3   :  { %484 = vst [vmem:[#allocation1 + $0x3] ss:$4 sm:$0xff] %v2138_v60  ;;  %vm441_vm6 = vcmp.gt.f32.partialorder %v399_v35, 0.33333334  ;;  %v2204_v32 = vsel %vm438_vm1, %v396_v25, 0.0  ;;  %v2208_v33 = vsel %vm439_vm4, %v397_v28, 0.0 }
  0xd4   :  { %v2147_v0 = vld.sshfl [vmem:[#allocation1 + $0x20] sm:$0xff pattern:$0x73625140]  ;;  %v2214_v43 = vsel %vm440_vm5, %v398_v31, 0.0  ;;  %v2217_v44 = vsel %vm441_vm6, %v399_v35, 0.0 }
  0xd5   :  { %486 = vst [vmem:[#allocation1 + $0x20] ss:$4 sm:$0xff] %v2141_v61  ;;  %v329_v27 = vrot.slane %v2147_v0, 1  ;;  %vm442_vm12 = vcmp.gt.f32.partialorder %v400_v53, 0.33333334 }
  0xd6   :  { %488 = vst [vmem:[#allocation1 + $0x21] ss:$4 sm:$0xff] %v2152_v3  ;;  %vm443_vm13 = vcmp.gt.f32.partialorder %v401_v54, 0.33333334  ;;  %v2253_v2 = vsel %vm442_vm12, %v400_v53, 0.0  ;;  %vm674_vm12 = vcmask 457728  }
  0xd7   :  { %v330_v37 = vsel %vm324_vm9, %v328_v34, %v329_v27  ;;  %v2255_v5 = vsel %vm443_vm13, %v401_v54, 0.0  ;;  %vm684_vm13 = vcmask 916480  }
  0xd8   :  { %v381_v41 = vrot.slane %v330_v37, 2  ;;  %v382_v24 = vrot.slane %v330_v37, 4  ;;  %v383_v36 = vrot.slane %v330_v37, 6  ;;  %v403_v45 = vadd.f32 %v330_v37, %v200_v52 }
  0xda   :  { %v2172_v15 = vld.sshfl [vmem:[#allocation1] sm:$0xff pattern:$0x73625140]  ;;  %v404_v47 = vadd.f32 %v381_v41, %v2124_v50  ;;  %v405_v48 = vadd.f32 %v382_v24, %v201_v58  ;;  %v406_v49 = vadd.f32 %v383_v36, %v202_v62  ;;  %vm445_vm7 = vcmp.gt.f32.partialorder %v403_v45, 0.33333334 }
  0xdb   :  { %491 = vst [vmem:[#allocation1] ss:$4 sm:$0xff] %v2174_v16  ;;  %v2233_v52 = vsel %vm445_vm7, %v403_v45, 0.0  ;;  %v2241_v58 = vsel %vm335_vm3, %v329_v27, 0.0  ;;  %vm884_vm7 = vcmask 1043456  }
  0xdc   :  { %492 = vst [vmem:[#allocation1 + $0x1] ss:$4 sm:$0xff] %v2177_v17  ;;  %vm446_vm8 = vcmp.gt.f32.partialorder %v404_v47, 0.33333334  ;;  %vm447_vm10 = vcmp.gt.f32.partialorder %v405_v48, 0.33333334  ;;  %v407_v6 = vadd.f32 %v2241_v58, %v203_v4 }
  0xdd   :  { %v2181_v20 = vld.sshfl [vmem:[#allocation1 + $0x20] sm:$0xff pattern:$0x73625140]  ;;  %493 = vst [vmem:[#allocation1 + $0x2] ss:$4 sm:$0xff] %v2179_v19  ;;  %v2237_v59 = vsel %vm446_vm8, %v404_v47, 0.0 }
  0xde   :  { %494 = vst [vmem:[#allocation1 + $0x3] ss:$4 sm:$0xff] %v2184_v23  ;;  %vm448_vm11 = vcmp.gt.f32.partialorder %v406_v49, 0.33333334  ;;  %v2243_v62 = vsel %vm447_vm10, %v405_v48, 0.0  ;;  %v384_v0 = vrot.slane %v2241_v58, 2 }
  0xdf   :  { %495 = vst [vmem:[#allocation1 + $0x20] ss:$4 sm:$0xff] %v2188_v26  ;;  %v2248_v63 = vsel %vm448_vm11, %v406_v49, 0.0  ;;  %vm449_vm14 = vcmp.gt.f32.partialorder %v407_v6, 0.33333334  ;;  %v199_v4 = vrot.slane %v2097_v30, 4 }
  0xe0   :  { %496 = vst [vmem:[#allocation1 + $0x21] ss:$4 sm:$0xff] %v2195_v29  ;;  %v408_v7 = vadd.f32 %v384_v0, %v2165_v11  ;;  %v2271_v10 = vsel %vm449_vm14, %v407_v6, 0.0  ;;  %v204_v30 = vrot.slane %v2165_v11, 2  ;;  %v385_v35 = vrot.slane %v2241_v58, 4 }
  0xe1   :  { %v366_v13 = vadd.f32 %v344_v12, %v199_v4  ;;  %v402_v28 = vadd.f32 %v380_v1, %v199_v4  ;;  %vm949_vm8 = vcmask 97280   ;;  %vm669_vm10 = vcmask 228352  }
  0xe2   :  { %vm450_vm15 = vcmp.gt.f32.partialorder %v408_v7, 0.33333334  ;;  %v373_v22 = vadd.f32 %v349_v38, %v204_v30  ;;  %v409_v41 = vadd.f32 %v385_v35, %v204_v30  ;;  %vm679_vm11 = vcmask 687104  }
  0xe3   :  { %v2273_v50 = vsel %vm450_vm15, %v408_v7, 0.0  ;;  %vm416_vm1 = vcmp.gt.f32.partialorder %v366_v13, 0.33333334  ;;  %vm444_vm5 = vcmp.gt.f32.partialorder %v402_v28, 0.33333334  ;;  %vm1255_vm14 = vcmask 261120  }
  0xe4   :  { %v2290_v21 = vsel %vm416_vm1, %v366_v13, 0.0  ;;  %vm423_vm4 = vcmp.gt.f32.partialorder %v373_v22, 0.33333334  ;;  %v2318_v37 = vsel %vm444_vm5, %v402_v28, 0.0  ;;  %vm451_vm6 = vcmp.gt.f32.partialorder %v409_v41, 0.33333334 }
  0xe5   :  { %v2206_v39 = vld.sshfl [vmem:[#allocation1] sm:$0xff pattern:$0x73625140]  ;;  %v2304_v27 = vsel %vm423_vm4, %v373_v22, 0.0  ;;  %v2331_v36 = vsel %vm451_vm6, %v409_v41, 0.0  ;;  %vm1307_vm15 = vcmask 850944  }
  0xe6   :  { %515 = vst [vmem:[#allocation1] ss:$4 sm:$0xff] %v2204_v32  ;;  %vm1409_vm1 = vcmask 1041408   ;;  %vm1412_vm4 = vcmask 1042432   ;;  %vm1493_vm5 = vcmask 1041409   ;;  %vm1559_vm6 = vcmask 982016  }
  0xe7   :  { %517 = vst [vmem:[#allocation1 + $0x1] ss:$4 sm:$0xff] %v2208_v33  ;;  %v2246_v40 = vld.sshfl [vmem:[#allocation1 + $0x20] sm:$0xff pattern:$0x73625140] }
  0xe8   :  { %519 = vst [vmem:[#allocation1 + $0x2] ss:$4 sm:$0xff] %v2214_v43 }
  0xe9   :  { %521 = vst [vmem:[#allocation1 + $0x3] ss:$4 sm:$0xff] %v2217_v44 }
  0xea   :  { %523 = vst [vmem:[#allocation1 + $0x20] ss:$4 sm:$0xff] %v2253_v2 }
  0xeb   :  { %525 = vst [vmem:[#allocation1 + $0x21] ss:$4 sm:$0xff] %v2255_v5 }
  0xf0   :  { %v2235_v57 = vld.sshfl [vmem:[#allocation1] sm:$0xff pattern:$0x73625140] }
  0xf1   :  { %528 = vst [vmem:[#allocation1] ss:$4 sm:$0xff] %v2233_v52 }
  0xf2   :  { %529 = vst [vmem:[#allocation1 + $0x1] ss:$4 sm:$0xff] %v2237_v59  ;;  %v2267_v9 = vld.sshfl [vmem:[#allocation1 + $0x20] sm:$0xff pattern:$0x73625140] }
  0xf3   :  { %530 = vst [vmem:[#allocation1 + $0x2] ss:$4 sm:$0xff] %v2243_v62 }
  0xf4   :  { %531 = vst [vmem:[#allocation1 + $0x3] ss:$4 sm:$0xff] %v2248_v63 }
  0xf5   :  { %532 = vst [vmem:[#allocation1 + $0x20] ss:$4 sm:$0xff] %v2271_v10 }
  0xf6   :  { %533 = vst [vmem:[#allocation1 + $0x21] ss:$4 sm:$0xff] %v2273_v50 }
  0xfb   :  { %v2263_v8 = vld.sshfl [vmem:[#allocation1] sm:$0xff pattern:$0x73625140] }
  0xfc   :  { %550 = vst [vmem:[#allocation1] ss:$4 sm:$0xff] %v2126_v51 }
  0xfd   :  { %552 = vst [vmem:[#allocation1 + $0x1] ss:$4 sm:$0xff] %v2131_v55  ;;  %v2283_v18 = vld.sshfl [vmem:[#allocation1 + $0x20] sm:$0xff pattern:$0x73625140] }
  0xfe   :  { %554 = vst [vmem:[#allocation1 + $0x2] ss:$4 sm:$0xff] %v2133_v56 }
  0xff   :  { %556 = vst [vmem:[#allocation1 + $0x3] ss:$4 sm:$0xff] %v2138_v60 }
 0x100   :  { %558 = vst [vmem:[#allocation1 + $0x20] ss:$4 sm:$0xff] %v2141_v61 }
 0x101   :  { %560 = vst [vmem:[#allocation1 + $0x21] ss:$4 sm:$0xff] %v2152_v3 }
 0x102   :  { %562 = vst [vmem:[#allocation1 + $0x22] ss:$4 sm:$0xff] %v2290_v21 }
 0x106   :  { %v2279_v14 = vld.sshfl [vmem:[#allocation1] sm:$0xff pattern:$0x73625140] }
 0x107   :  { %565 = vst [vmem:[#allocation1] ss:$4 sm:$0xff] %v2174_v16  ;;  %v574_v1 = vrot.slane %v2279_v14, 1 }
 0x108   :  { %566 = vst [vmem:[#allocation1 + $0x1] ss:$4 sm:$0xff] %v2177_v17 }
 0x109   :  { %567 = vst [vmem:[#allocation1 + $0x2] ss:$4 sm:$0xff] %v2179_v19  ;;  %v2299_v11 = vld.sshfl [vmem:[#allocation1 + $0x20] sm:$0xff pattern:$0x73625140] }
 0x10a   :  { %568 = vst [vmem:[#allocation1 + $0x3] ss:$4 sm:$0xff] %v2184_v23 }
 0x10b   :  { %569 = vst [vmem:[#allocation1 + $0x20] ss:$4 sm:$0xff] %v2188_v26 }
 0x10c   :  { %570 = vst [vmem:[#allocation1 + $0x21] ss:$4 sm:$0xff] %v2195_v29 }
 0x10d   :  { %571 = vst [vmem:[#allocation1 + $0x22] ss:$4 sm:$0xff] %v2304_v27 }
 0x111   :  { %v2294_v25 = vld.sshfl [vmem:[#allocation1] sm:$0xff pattern:$0x73625140] }
 0x112   :  { %594 = vst [vmem:[#allocation1] ss:$4 sm:$0xff] %v2204_v32 }
 0x113   :  { %596 = vst [vmem:[#allocation1 + $0x1] ss:$4 sm:$0xff] %v2208_v33 }
 0x114   :  { %598 = vst [vmem:[#allocation1 + $0x2] ss:$4 sm:$0xff] %v2214_v43  ;;  %v2313_v34 = vld.sshfl [vmem:[#allocation1 + $0x20] sm:$0xff pattern:$0x73625140] }
 0x115   :  { %600 = vst [vmem:[#allocation1 + $0x3] ss:$4 sm:$0xff] %v2217_v44  ;;  %v578_v14 = vrot.slane %v2313_v34, 1  ;;  %v931_v34 = vld [vmem:[#allocation7 + $0xc0] sm:$0xff] }
 0x116   :  { %602 = vst [vmem:[#allocation1 + $0x20] ss:$4 sm:$0xff] %v2253_v2 }
 0x117   :  { %604 = vst [vmem:[#allocation1 + $0x21] ss:$4 sm:$0xff] %v2255_v5 }
 0x118   :  { %606 = vst [vmem:[#allocation1 + $0x22] ss:$4 sm:$0xff] %v2318_v37 }
 0x11c   :  { %v2308_v31 = vld.sshfl [vmem:[#allocation1] sm:$0xff pattern:$0x73625140] }
 0x11d   :  { %609 = vst [vmem:[#allocation1] ss:$4 sm:$0xff] %v2233_v52 }
 0x11e   :  { %610 = vst [vmem:[#allocation1 + $0x1] ss:$4 sm:$0xff] %v2237_v59 }
 0x11f   :  { %611 = vst [vmem:[#allocation1 + $0x2] ss:$4 sm:$0xff] %v2243_v62  ;;  %v2327_v24 = vld.sshfl [vmem:[#allocation1 + $0x20] sm:$0xff pattern:$0x73625140] }
 0x120   :  { %612 = vst [vmem:[#allocation1 + $0x3] ss:$4 sm:$0xff] %v2248_v63 }
 0x121   :  { %613 = vst [vmem:[#allocation1 + $0x20] ss:$4 sm:$0xff] %v2271_v10 }
 0x122   :  { %614 = vst [vmem:[#allocation1 + $0x21] ss:$4 sm:$0xff] %v2273_v50 }
 0x123   :  { %615 = vst [vmem:[#allocation1 + $0x22] ss:$4 sm:$0xff] %v2331_v36 }
 0x127   :  { %v2322_v42 = vld.sshfl [vmem:[#allocation1] sm:$0xff pattern:$0x73625140] }
 0x128   :  { %636 = vst [vmem:[#allocation1] ss:$4 sm:$0xff] %v2131_v55 }
 0x129   :  { %638 = vst [vmem:[#allocation1 + $0x1] ss:$4 sm:$0xff] %v2133_v56 }
 0x12a   :  { %640 = vst [vmem:[#allocation1 + $0x2] ss:$4 sm:$0xff] %v2138_v60  ;;  %v2339_v46 = vld.sshfl [vmem:[#allocation1 + $0x20] sm:$0xff pattern:$0x73625140] }
 0x12b   :  { %642 = vst [vmem:[#allocation1 + $0x3] ss:$4 sm:$0xff] %v2141_v61 }
 0x12c   :  { %644 = vst [vmem:[#allocation1 + $0x20] ss:$4 sm:$0xff] %v2152_v3 }
 0x12d   :  { %646 = vst [vmem:[#allocation1 + $0x21] ss:$4 sm:$0xff] %v2290_v21 }
 0x132   :  { %v647_v45 = vld.sshfl [vmem:[#allocation1] sm:$0xff pattern:$0x73625140] }
 0x133   :  { %649 = vst [vmem:[#allocation1] ss:$4 sm:$0xff] %v2177_v17  ;;  %657 = vrot.lane.b32.xlu1 %v647_v45, %s1957_s0 }
 0x134   :  { %650 = vst [vmem:[#allocation1 + $0x1] ss:$4 sm:$0xff] %v2179_v19  ;;  %v648_v48 = vld.sshfl [vmem:[#allocation1 + $0x20] sm:$0xff pattern:$0x73625140] }
 0x135   :  { %651 = vst [vmem:[#allocation1 + $0x2] ss:$4 sm:$0xff] %v2184_v23  ;;  %659 = vrot.lane.b32.xlu2 %v648_v48, %s1957_s0 }
 0x136   :  { %652 = vst [vmem:[#allocation1 + $0x3] ss:$4 sm:$0xff] %v2188_v26 }
 0x137   :  { %653 = vst [vmem:[#allocation1 + $0x20] ss:$4 sm:$0xff] %v2195_v29 }
 0x138   :  { %654 = vst [vmem:[#allocation1 + $0x21] ss:$4 sm:$0xff] %v2304_v27 }
 0x13d   :  { %v2344_v47 = vld.sshfl [vmem:[#allocation1] sm:$0xff pattern:$0x73625140] }
 0x13e   :  { %689 = vst [vmem:[#allocation1] ss:$4 sm:$0xff] %v2204_v32 }
 0x13f   :  { %691 = vst [vmem:[#allocation1 + $0x1] ss:$4 sm:$0xff] %v2208_v33  ;;  %v2357_v53 = vld.sshfl [vmem:[#allocation1 + $0x20] sm:$0xff pattern:$0x73625140] }
 0x140   :  { %693 = vst [vmem:[#allocation1 + $0x2] ss:$4 sm:$0xff] %v2214_v43 }
 0x141   :  { %695 = vst [vmem:[#allocation1 + $0x3] ss:$4 sm:$0xff] %v2217_v44 }
 0x142   :  { %697 = vst [vmem:[#allocation1 + $0x20] ss:$4 sm:$0xff] %v2253_v2 }
 0x143   :  { %699 = vst [vmem:[#allocation1 + $0x21] ss:$4 sm:$0xff] %v2255_v5 }
 0x148   :  { %v2353_v49 = vld.sshfl [vmem:[#allocation1] sm:$0xff pattern:$0x73625140] }
 0x149   :  { %702 = vst [vmem:[#allocation1] ss:$4 sm:$0xff] %v2233_v52 }
 0x14a   :  { %703 = vst [vmem:[#allocation1 + $0x1] ss:$4 sm:$0xff] %v2237_v59  ;;  %v2367_v58 = vld.sshfl [vmem:[#allocation1 + $0x20] sm:$0xff pattern:$0x73625140] }
 0x14b   :  { %704 = vst [vmem:[#allocation1 + $0x2] ss:$4 sm:$0xff] %v2243_v62 }
 0x14c   :  { %705 = vst [vmem:[#allocation1 + $0x3] ss:$4 sm:$0xff] %v2248_v63 }
 0x14d   :  { %706 = vst [vmem:[#allocation1 + $0x20] ss:$4 sm:$0xff] %v2271_v10 }
 0x14e   :  { %707 = vst [vmem:[#allocation1 + $0x21] ss:$4 sm:$0xff] %v2273_v50 }
 0x153   :  { %v2363_v54 = vld.sshfl [vmem:[#allocation1] sm:$0xff pattern:$0x73625140] }
 0x154   :  { %714 = vst [vmem:[#allocation1] ss:$4 sm:$0xff] %v2126_v51 }
 0x155   :  { %716 = vst [vmem:[#allocation1 + $0x1] ss:$4 sm:$0xff] %v2131_v55  ;;  %v2375_v6 = vld.sshfl [vmem:[#allocation1 + $0x20] sm:$0xff pattern:$0x73625140] }
 0x156   :  { %718 = vst [vmem:[#allocation1 + $0x2] ss:$4 sm:$0xff] %v2133_v56 }
 0x157   :  { %720 = vst [vmem:[#allocation1 + $0x3] ss:$4 sm:$0xff] %v2138_v60 }
 0x158   :  { %722 = vst [vmem:[#allocation1 + $0x20] ss:$4 sm:$0xff] %v2141_v61 }
 0x159   :  { %724 = vst [vmem:[#allocation1 + $0x21] ss:$4 sm:$0xff] %v2152_v3 }
 0x15a   :  { %726 = vst [vmem:[#allocation1 + $0x22] ss:$4 sm:$0xff] %v2290_v21 }
 0x15e   :  { %v727_v0 = vld.sshfl [vmem:[#allocation1] sm:$0xff pattern:$0x73625140] }
 0x15f   :  { %730 = vst [vmem:[#allocation1 + $0x1] ss:$4 sm:$0xff] %v2177_v17 }
 0x160   :  { %731 = vst [vmem:[#allocation1 + $0x2] ss:$4 sm:$0xff] %v2179_v19 }
 0x161   :  { %729 = vst [vmem:[#allocation1] ss:$4 sm:$0xff] %v2174_v16  ;;  %v728_v7 = vld.sshfl [vmem:[#allocation1 + $0x20] sm:$0xff pattern:$0x73625140]  ;;  %v738_v16 = vrot.slane %v727_v0, 1 }
 0x162   :  { %732 = vst [vmem:[#allocation1 + $0x3] ss:$4 sm:$0xff] %v2184_v23  ;;  %v739_v4 = vrot.slane %v728_v7, 1  ;;  %v619_v0 = vrot.slane %v2327_v24, 1  ;;  %v577_v7 = vrot.slane %v2294_v25, 1 }
 0x163   :  { %733 = vst [vmem:[#allocation1 + $0x20] ss:$4 sm:$0xff] %v2188_v26 }
 0x164   :  { %734 = vst [vmem:[#allocation1 + $0x21] ss:$4 sm:$0xff] %v2195_v29  ;;  %v1695_v12 = vpack.i.bf16 %v739_v4, %v2267_v9  ;;  %v740_v13 = vsel %vm324_vm9, %v738_v16, %v739_v4 }
 0x165   :  { %735 = vst [vmem:[#allocation1 + $0x22] ss:$4 sm:$0xff] %v2304_v27  ;;  %v1700_v30 = vpack.i.bf16 %v740_v13, %v2235_v57  ;;  %v575_v57 = vrot.slane %v2299_v11, 1  ;;  %v933_v13 = vld [vmem:[#allocation7 + $0xd0] sm:$0xff] }
 0x166   :  { %1696 = vrot.lane.b32.xlu2 %v1695_v12, %s1958_s25 }
 0x167   :  { %1701 = vrot.lane.b32.xlu0 %v1700_v30, %s1958_s25  ;;  %v934_v30 = vld [vmem:[#allocation7 + $0xd8] sm:$0xff] }
 0x169   :  { %v2382_v51 = vld.sshfl [vmem:[#allocation1] sm:$0xff pattern:$0x73625140] }
 0x16a   :  { %756 = vst [vmem:[#allocation1] ss:$4 sm:$0xff] %v2204_v32 }
 0x16b   :  { %758 = vst [vmem:[#allocation1 + $0x1] ss:$4 sm:$0xff] %v2208_v33 }
 0x16c   :  { %760 = vst [vmem:[#allocation1 + $0x2] ss:$4 sm:$0xff] %v2214_v43  ;;  %v2396_v32 = vld.sshfl [vmem:[#allocation1 + $0x20] sm:$0xff pattern:$0x73625140] }
 0x16d   :  { %762 = vst [vmem:[#allocation1 + $0x3] ss:$4 sm:$0xff] %v2217_v44 }
 0x16e   :  { %764 = vst [vmem:[#allocation1 + $0x20] ss:$4 sm:$0xff] %v2253_v2 }
 0x16f   :  { %766 = vst [vmem:[#allocation1 + $0x21] ss:$4 sm:$0xff] %v2255_v5 }
 0x170   :  { %768 = vst [vmem:[#allocation1 + $0x22] ss:$4 sm:$0xff] %v2318_v37 }
 0x174   :  { %v769_v38 = vld.sshfl [vmem:[#allocation1] sm:$0xff pattern:$0x73625140] }
 0x175   :  { %771 = vst [vmem:[#allocation1] ss:$4 sm:$0xff] %v2233_v52  ;;  %v780_v28 = vrot.slane %v769_v38, 1  ;;  %v576_v52 = vsel %vm324_vm9, %v574_v1, %v575_v57  ;;  %v929_v38 = vld [vmem:[#allocation7 + $0xb0] sm:$0xff] }
 0x176   :  { %772 = vst [vmem:[#allocation1 + $0x1] ss:$4 sm:$0xff] %v2237_v59  ;;  %v925_v1 = vld [vmem:[#allocation7 + $0x90] sm:$0xff] }
 0x177   :  { %773 = vst [vmem:[#allocation1 + $0x2] ss:$4 sm:$0xff] %v2243_v62  ;;  %v770_v9 = vld.sshfl [vmem:[#allocation1 + $0x20] sm:$0xff pattern:$0x73625140] }
 0x178   :  { %774 = vst [vmem:[#allocation1 + $0x3] ss:$4 sm:$0xff] %v2248_v63  ;;  %v781_v22 = vrot.slane %v770_v9, 1  ;;  %v927_v9 = vld [vmem:[#allocation7 + $0xa0] sm:$0xff] }
 0x179   :  { %775 = vst [vmem:[#allocation1 + $0x20] ss:$4 sm:$0xff] %v2271_v10 }
 0x17a   :  { %776 = vst [vmem:[#allocation1 + $0x21] ss:$4 sm:$0xff] %v2273_v50  ;;  %v1705_v35 = vpack.i.bf16 %v781_v22, %v575_v57  ;;  %v782_v41 = vsel %vm324_vm9, %v780_v28, %v781_v22  ;;  %v930_v57 = vld [vmem:[#allocation7 + $0xb8] sm:$0xff]  ;;  %v928_v22 = vld [vmem:[#allocation7 + $0xa8] sm:$0xff] }
 0x17b   :  { %777 = vst [vmem:[#allocation1 + $0x22] ss:$4 sm:$0xff] %v2331_v36  ;;  %v1710_v45 = vpack.i.bf16 %v782_v41, %v576_v52  ;;  %v926_v28 = vld [vmem:[#allocation7 + $0x98] sm:$0xff]  ;;  %v921_v52 = vld [vmem:[#allocation7 + $0x70] sm:$0xff] }
 0x17c   :  { %1706 = vrot.lane.b32.xlu2 %v1705_v35, %s1959_s26  ;;  %v923_v35 = vld [vmem:[#allocation7 + $0x80] sm:$0xff]  ;;  %v922_v41 = vld [vmem:[#allocation7 + $0x78] sm:$0xff] }
 0x17d   :  { %1711 = vrot.lane.b32.xlu0 %v1710_v45, %s1959_s26  ;;  %v919_v45 = vld [vmem:[#allocation7 + $0x60] sm:$0xff] }
 0x17f   :  { %v778_v48 = vld.sshfl [vmem:[#allocation1] sm:$0xff pattern:$0x73625140] }
 0x180   :  { %798 = vst [vmem:[#allocation1] ss:$4 sm:$0xff] %v2131_v55  ;;  %v783_v4 = vrot.slane %v778_v48, 1  ;;  %v618_v55 = vrot.slane %v2308_v31, 1  ;;  %v920_v48 = vld [vmem:[#allocation7 + $0x68] sm:$0xff] }
 0x181   :  { %800 = vst [vmem:[#allocation1 + $0x1] ss:$4 sm:$0xff] %v2133_v56  ;;  %v579_v56 = vsel %vm324_vm9, %v577_v7, %v578_v14  ;;  %v916_v7 = vld [vmem:[#allocation7 + $0x48] sm:$0xff] }
 0x182   :  { %802 = vst [vmem:[#allocation1 + $0x2] ss:$4 sm:$0xff] %v2138_v60  ;;  %v2419_v11 = vld.sshfl [vmem:[#allocation1 + $0x20] sm:$0xff pattern:$0x73625140]  ;;  %v620_v25 = vsel %vm324_vm9, %v618_v55, %v619_v0  ;;  %v911_v55 = vld [vmem:[#allocation7 + $0x20] sm:$0xff] }
 0x183   :  { %804 = vst [vmem:[#allocation1 + $0x3] ss:$4 sm:$0xff] %v2141_v61  ;;  %v784_v16 = vrot.slane %v2419_v11, 1  ;;  %v918_v11 = vld [vmem:[#allocation7 + $0x58] sm:$0xff] }
 0x184   :  { %806 = vst [vmem:[#allocation1 + $0x20] ss:$4 sm:$0xff] %v2152_v3  ;;  %v742_v3 = vrot.slane %v2396_v32, 1  ;;  %v932_v32 = vld [vmem:[#allocation7 + $0xc8] sm:$0xff] }
 0x185   :  { %808 = vst [vmem:[#allocation1 + $0x21] ss:$4 sm:$0xff] %v2290_v21  ;;  %v785_v60 = vsel %vm324_vm9, %v783_v4, %v784_v16  ;;  %v913_v4 = vld [vmem:[#allocation7 + $0x30] sm:$0xff] }
 0x186   :  { %v1730_v61 = vpack.i.bf16 %v785_v60, %v579_v56  ;;  %v1740_v31 = vpack.i.bf16 %v742_v3, %v2283_v18  ;;  %v622_v18 = vrot.slane %v2339_v46, 1  ;;  %v935_v46 = vld [vmem:[#allocation7 + $0xe0] sm:$0xff]  ;;  %v912_v56 = vld [vmem:[#allocation7 + $0x28] sm:$0xff]  ;;  %v909_v60 = vld [vmem:[#allocation7 + $0x10] sm:$0xff] }
 0x188   :  { %1731 = vrot.lane.b32.xlu2 %v1730_v61, %s1959_s26  ;;  %v910_v61 = vld [vmem:[#allocation7 + $0x18] sm:$0xff] }
 0x18a   :  { %v809_v24 = vld.sshfl [vmem:[#allocation1] sm:$0xff pattern:$0x73625140] }
 0x18b   :  { %811 = vst [vmem:[#allocation1] ss:$4 sm:$0xff] %v2177_v17  ;;  %v1715_v12 = vpack.i.bf16 %v809_v24, %v620_v25  ;;  %v907_v25 = vld [vmem:[#allocation7] sm:$0xff]  ;;  %v908_v24 = vld [vmem:[#allocation7 + $0x8] sm:$0xff] }
 0x18c   :  { %812 = vst [vmem:[#allocation1 + $0x1] ss:$4 sm:$0xff] %v2179_v19  ;;  %v810_v21 = vld.sshfl [vmem:[#allocation1 + $0x20] sm:$0xff pattern:$0x73625140] }
 0x18d   :  { %813 = vst [vmem:[#allocation1 + $0x2] ss:$4 sm:$0xff] %v2184_v23  ;;  %1716 = vrot.lane.b32.xlu1 %v1715_v12, %s1960_s1  ;;  %v1720_v17 = vpack.i.bf16 %v810_v21, %v619_v0  ;;  %v741_v23 = vrot.slane %v2382_v51, 1  ;;  %v915_v0 = vld [vmem:[#allocation7 + $0x40] sm:$0xff] }
 0x18e   :  { %814 = vst [vmem:[#allocation1 + $0x3] ss:$4 sm:$0xff] %v2188_v26 }
 0x18f   :  { %815 = vst [vmem:[#allocation1 + $0x20] ss:$4 sm:$0xff] %v2195_v29  ;;  %v743_v29 = vsel %vm324_vm9, %v741_v23, %v742_v3  ;;  %v660_v21 = vpop.permute.xlu2 %659 }
 0x190   :  { %816 = vst [vmem:[#allocation1 + $0x21] ss:$4 sm:$0xff] %v2304_v27  ;;  %1741 = vrot.lane.b32.xlu2 %v1740_v31, %s1958_s25  ;;  %v941_v27 = vld [vmem:[#allocation7 + $0x110] sm:$0xf]  ;;  %v1725_v51 = vpack.i.bf16 %v743_v29, %v2263_v8 }
 0x191   :  { %1657 = vmatpush.msk.msra.mxu3 %vm884_vm7, %v941_v27 }
 0x195   :  { %1721 = vrot.lane.b32.xlu1 %v1720_v17, %s1960_s1  ;;  %v817_v19 = vld.sshfl [vmem:[#allocation1] sm:$0xff pattern:$0x73625140] }
 0x196   :  { %831 = vst [vmem:[#allocation1] ss:$4 sm:$0xff] %v2208_v33  ;;  %v942_v33 = vld [vmem:[#allocation7 + $0x118] sm:$0xf] }
 0x197   :  { %833 = vst [vmem:[#allocation1 + $0x1] ss:$4 sm:$0xff] %v2214_v43  ;;  %v818_v26 = vld.sshfl [vmem:[#allocation1 + $0x20] sm:$0xff pattern:$0x73625140]  ;;  %1664 = vmatpush.msk.msrb.mxu1 %vm884_vm7, %v942_v33 }
 0x198   :  { %835 = vst [vmem:[#allocation1 + $0x2] ss:$4 sm:$0xff] %v2217_v44  ;;  %630 = vrot.lane.b32.xlu2 %v622_v18, %s1960_s1  ;;  %v939_v44 = vld [vmem:[#allocation7 + $0x100] sm:$0xff] }
 0x199   :  { %837 = vst [vmem:[#allocation1 + $0x3] ss:$4 sm:$0xff] %v2253_v2  ;;  %v940_v2 = vld [vmem:[#allocation7 + $0x108] sm:$0xff]  ;;  %1020 = vmatpush.msra.mxu3 %v939_v44 }
 0x19a   :  { %839 = vst [vmem:[#allocation1 + $0x20] ss:$4 sm:$0xff] %v2255_v5  ;;  %1090 = vmatpush.msrb.mxu1 %v940_v2 }
 0x19b   :  { %841 = vst [vmem:[#allocation1 + $0x21] ss:$4 sm:$0xff] %v2318_v37 }
 0x19d   :  { %1726 = vrot.lane.b32.xlu1 %v1725_v51, %s1958_s25 }
 0x1a0   :  { %v842_v43 = vld.sshfl [vmem:[#allocation1] sm:$0xff pattern:$0x73625140] }
 0x1a1   :  { %852 = vrot.lane.b32.xlu0 %v842_v43, %s1957_s0  ;;  %844 = vst [vmem:[#allocation1] ss:$4 sm:$0xff] %v2237_v59  ;;  %v621_v59 = vrot.slane %v2322_v42, 1  ;;  %v937_v42 = vld [vmem:[#allocation7 + $0xf0] sm:$0xff] }
 0x1a2   :  { %845 = vst [vmem:[#allocation1 + $0x1] ss:$4 sm:$0xff] %v2243_v62  ;;  %v843_v8 = vld.sshfl [vmem:[#allocation1 + $0x20] sm:$0xff pattern:$0x73625140]  ;;  %970 = vmatpush.msra.mxu2 %v937_v42 }
 0x1a3   :  { %846 = vst [vmem:[#allocation1 + $0x2] ss:$4 sm:$0xff] %v2248_v63  ;;  %v623_v37 = vsel %vm324_vm9, %v621_v59, %v622_v18 }
 0x1a4   :  { %847 = vst [vmem:[#allocation1 + $0x3] ss:$4 sm:$0xff] %v2271_v10  ;;  %v1735_v10 = vpack.i.bf16 %v817_v19, %v623_v37  ;;  %971 = vmatpush.msra.mxu2 %v935_v46 }
 0x1a5   :  { %v2462_v5 = vpop.permute.xlu1 %657  ;;  %848 = vst [vmem:[#allocation1 + $0x20] ss:$4 sm:$0xff] %v2273_v50  ;;  %661 = vrot.lane.b32.xlu1 %v2344_v47, %s1957_s0  ;;  %v1745_v50 = vpack.i.bf16 %v784_v16, %v578_v14  ;;  %v936_v47 = vld [vmem:[#allocation7 + $0xe8] sm:$0xff]  ;;  %v917_v14 = vld [vmem:[#allocation7 + $0x50] sm:$0xff]  ;;  %v914_v16 = vld [vmem:[#allocation7 + $0x38] sm:$0xff] }
 0x1a6   :  { %1658 = vmatmul.msk.f32.vlgmr.msra.gmra.mxu3 %vm949_vm8, %v2462_v5  ;;  %1665 = vmatmul.msk.f32.vlgmr.msrb.gmra.mxu1 %vm949_vm8, %v2462_v5  ;;  %849 = vst [vmem:[#allocation1 + $0x21] ss:$4 sm:$0xff] %v2331_v36  ;;  %v938_v36 = vld [vmem:[#allocation7 + $0xf8] sm:$0xff] }
 0x1a7   :  { %1040 = vmatpush.msrb.mxu0 %v938_v36  ;;  %972 = vmatpush.msra.mxu2 %v933_v13 }
 0x1a9   :  { %854 = vrot.lane.b32.xlu0 %v843_v8, %s1957_s0  ;;  %1041 = vmatpush.msrb.mxu0 %v936_v47 }
 0x1aa   :  { %973 = vmatpush.msra.mxu2 %v931_v34 }
 0x1ab   :  { %v850_v62 = vld.sshfl [vmem:[#allocation1] sm:$0xff pattern:$0x73625140]  ;;  %1042 = vmatpush.msrb.mxu0 %v934_v30 }
 0x1ac   :  { %974 = vmatpush.msra.mxu2 %v929_v38 }
 0x1ad   :  { %v851_v63 = vld.sshfl [vmem:[#allocation1 + $0x20] sm:$0xff pattern:$0x73625140]  ;;  %856 = vrot.lane.b32.xlu1 %v850_v62, %s1957_s0  ;;  %1043 = vmatpush.msrb.mxu0 %v932_v32 }
 0x1ae   :  { %858 = vrot.lane.b32.xlu2 %v851_v63, %s1957_s0  ;;  %975 = vmatpush.msra.mxu2 %v927_v9 }
 0x1af   :  { %1044 = vmatpush.msrb.mxu0 %v930_v57 }
 0x1b0   :  { %976 = vmatpush.msra.mxu2 %v925_v1 }
 0x1b1   :  { %1736 = vrot.lane.b32.xlu0 %v1735_v10, %s1960_s1  ;;  %1045 = vmatpush.msrb.mxu0 %v928_v22 }
 0x1b2   :  { %977 = vmatpush.msra.mxu2 %v923_v35 }
 0x1b3   :  { %1046 = vmatpush.msrb.mxu0 %v926_v28 }
 0x1b4   :  { %978 = vmatpush.msra.mxu2 %v921_v52 }
 0x1b5   :  { %825 = vrot.lane.b32.xlu1 %v818_v26, %s1960_s1 }
 0x1b6   :  { %979 = vmatpush.msra.mxu2 %v919_v45 }
 0x1b8   :  { %980 = vmatpush.msra.mxu2 %v917_v14 }
 0x1b9   :  { %1746 = vrot.lane.b32.xlu0 %v1745_v50, %s1959_s26 }
 0x1ba   :  { %981 = vmatpush.msra.mxu2 %v915_v0 }
 0x1bc   :  { %982 = vmatpush.msra.mxu2 %v913_v4 }
 0x1be   :  { %983 = vmatpush.msra.mxu2 %v911_v55 }
 0x1c0   :  { %984 = vmatpush.msra.mxu2 %v909_v60  ;;  %v1697_v27 = vpop.permute.xlu2 %1696 }
 0x1c1   :  { %663 = vrot.lane.b32.xlu0 %v2357_v53, %s1957_s0  ;;  %v924_v53 = vld [vmem:[#allocation7 + $0x88] sm:$0xff]  ;;  %v1698_v44 = vunpack.i.l.bf16 %v1697_v27  ;;  %v1699_v30 = vunpack.i.h.bf16 %v1697_v27 }
 0x1c2   :  { %1047 = vmatpush.msrb.mxu0 %v924_v53  ;;  %985 = vmatpush.msra.mxu2 %v907_v25 }
 0x1c3   :  { %v671_v63 = vsel %vm669_vm10, %v2181_v20, %v1698_v44  ;;  %v865_v9 = vsel %vm669_vm10, %v2367_v58, %v1699_v30 }
 0x1c4   :  { %1048 = vmatpush.msrb.mxu0 %v922_v41 }
 0x1c6   :  { %1049 = vmatpush.msrb.mxu0 %v920_v48 }
 0x1c8   :  { %1050 = vmatpush.msrb.mxu0 %v918_v11 }
 0x1ca   :  { %1051 = vmatpush.msrb.mxu0 %v916_v7 }
 0x1cc   :  { %1052 = vmatpush.msrb.mxu0 %v914_v16 }
 0x1ce   :  { %1053 = vmatpush.msrb.mxu0 %v912_v56 }
 0x1d0   :  { %1054 = vmatpush.msrb.mxu0 %v910_v61 }
 0x1d2   :  { %1055 = vmatpush.msrb.mxu0 %v908_v24 }
 0x1d6   :  { %v1707_v43 = vpop.permute.xlu2 %1706 }
 0x1d7   :  { %v1708_v8 = vunpack.i.l.bf16 %v1707_v43  ;;  %v1709_v32 = vunpack.i.h.bf16 %v1707_v43 }
 0x1d9   :  { %v1702_v12 = vpop.permute.xlu0 %1701  ;;  %v676_v10 = vsel %vm674_vm12, %v671_v63, %v1708_v8  ;;  %v869_v1 = vsel %vm674_vm12, %v865_v9, %v1709_v32 }
 0x1da   :  { %v1703_v17 = vunpack.i.l.bf16 %v1702_v12  ;;  %v1704_v2 = vunpack.i.h.bf16 %v1702_v12 }
 0x1dc   :  { %v670_v23 = vsel %vm669_vm10, %v2172_v15, %v1703_v17  ;;  %v864_v37 = vsel %vm669_vm10, %v2353_v49, %v1704_v2 }
 0x1e2   :  { %v1732_v22 = vpop.permute.xlu2 %1731 }
 0x1e3   :  { %v1733_v0 = vunpack.i.l.bf16 %v1732_v22  ;;  %v1734_v12 = vunpack.i.h.bf16 %v1732_v22 }
 0x1ea   :  { %v1742_v7 = vpop.permute.xlu2 %1741 }
 0x1ef   :  { %v1712_v3 = vpop.permute.xlu0 %1711 }
 0x1f0   :  { %v1713_v31 = vunpack.i.l.bf16 %v1712_v3  ;;  %v1714_v59 = vunpack.i.h.bf16 %v1712_v3  ;;  %v1744_v3 = vunpack.i.h.bf16 %v1742_v7 }
 0x1f2   :  { %v675_v29 = vsel %vm674_vm12, %v670_v23, %v1713_v31  ;;  %v867_v27 = vsel %vm669_vm10, %v2375_v6, %v1744_v3 }
 0x1ff   :  { %v1717_v19 = vpop.permute.xlu1 %1716 }
 0x200   :  { %v1718_v26 = vunpack.i.l.bf16 %v1717_v19  ;;  %v1719_v62 = vunpack.i.h.bf16 %v1717_v19 }
 0x202   :  { %v680_v18 = vsel %vm679_vm11, %v675_v29, %v1718_v26  ;;  %v631_v26 = vpop.permute.xlu2 %630 }
 0x203   :  { %v685_v33 = vsel %vm684_vm13, %v680_v18, %v2462_v5  ;;  %v868_v5 = vsel %vm674_vm12, %v864_v37, %v1714_v59 }
 0x204   :  { %986 = vmatmul.f32.vlgmr.msra.gmra.mxu2 %v685_v33  ;;  %1056 = vmatmul.f32.vlgmr.msrb.gmra.mxu0 %v685_v33  ;;  %v872_v36 = vsel %vm679_vm11, %v868_v5, %v1719_v62 }
 0x207   :  { %v1722_v51 = vpop.permute.xlu1 %1721 }
 0x208   :  { %v1723_v15 = vunpack.i.l.bf16 %v1722_v51  ;;  %v1724_v38 = vunpack.i.h.bf16 %v1722_v51 }
 0x20a   :  { %v681_v46 = vsel %vm679_vm11, %v676_v10, %v1723_v15  ;;  %v873_v28 = vsel %vm679_vm11, %v869_v1, %v1724_v38  ;;  %v859_v63 = vpop.permute.xlu2 %858 }
 0x20b   :  { %v686_v49 = vsel %vm684_vm13, %v681_v46, %v660_v21  ;;  %v895_v5 = vrot.slane %v859_v63, 4 }
 0x20f   :  { %v1727_v50 = vpop.permute.xlu1 %1726 }
 0x210   :  { %v1728_v48 = vunpack.i.l.bf16 %v1727_v50  ;;  %v1729_v55 = vunpack.i.h.bf16 %v1727_v50 }
 0x212   :  { %v672_v11 = vsel %vm669_vm10, %v2206_v39, %v1728_v48  ;;  %v866_v39 = vsel %vm669_vm10, %v2363_v54, %v1729_v55 }
 0x213   :  { %v853_v42 = vpop.permute.xlu0 %852  ;;  %v677_v56 = vsel %vm674_vm12, %v672_v11, %v1733_v0  ;;  %v870_v31 = vsel %vm674_vm12, %v866_v39, %v1734_v12 }
 0x214   :  { %v876_v47 = vsel %vm684_vm13, %v872_v36, %v853_v42  ;;  %v886_v13 = vrot.slane %v853_v42, 4  ;;  %v943_v36 = vld [vmem:[%s2694_s4] sm:$0x3]  ;;  %s1961_s4 = smov 72  }
 0x215   :  { %v885_v34 = vrot.slane %v876_v47, 4  ;;  %v2551_v46 = vperm.slane %v943_v36, 1  ;;  %v945_v32 = vperm.slane %v943_v36, 0 }
 0x216   :  { %v904_v20 = vsel %vm884_vm7, %v660_v21, %v886_v13  ;;  %v1743_v21 = vunpack.i.l.bf16 %v1742_v7 }
 0x217   :  { %1659 = vmatmul.msk.f32.gmra.mxu3 %vm949_vm8, %v904_v20  ;;  %1666 = vmatmul.msk.f32.gmra.mxu1 %vm949_vm8, %v904_v20  ;;  %v903_v57 = vsel %vm884_vm7, %v686_v49, %v885_v34  ;;  %v662_v41 = vpop.permute.xlu1 %661 }
 0x218   :  { %989 = vmatmul.f32.gmra.mxu2 %v903_v57  ;;  %1059 = vmatmul.f32.gmra.mxu0 %v903_v57  ;;  %v673_v18 = vsel %vm669_vm10, %v2246_v40, %v1743_v21 }
 0x21b   :  { %v855_v35 = vpop.permute.xlu0 %854 }
 0x21c   :  { %v877_v53 = vsel %vm684_vm13, %v873_v28, %v855_v35  ;;  %v889_v52 = vrot.slane %v855_v35, 4 }
 0x21d   :  { %v887_v45 = vrot.slane %v877_v53, 4 }
 0x21e   :  { %v890_v14 = vsel %vm884_vm7, %v886_v13, %v889_v52 }
 0x21f   :  { %1660 = vmatmul.msk.f32.gmra.mxu3 %vm949_vm8, %v890_v14  ;;  %1667 = vmatmul.msk.f32.gmra.mxu1 %vm949_vm8, %v890_v14  ;;  %v888_v58 = vsel %vm884_vm7, %v885_v34, %v887_v45  ;;  %v857_v60 = vpop.permute.xlu1 %856 }
 0x220   :  { %992 = vmatmul.f32.gmra.mxu2 %v888_v58  ;;  %1062 = vmatmul.f32.gmra.mxu0 %v888_v58  ;;  %v892_v44 = vrot.slane %v857_v60, 4 }
 0x222   :  { %v896_v50 = vsel %vm884_vm7, %v892_v44, %v895_v5 }
 0x223   :  { %v1737_v4 = vpop.permute.xlu0 %1736  ;;  %v1092_v30 = vpop.f32.mrf.mxu1 }
 0x224   :  { %v1738_v16 = vunpack.i.l.bf16 %v1737_v4  ;;  %v1739_v24 = vunpack.i.h.bf16 %v1737_v4 }
 0x226   :  { %v682_v61 = vsel %vm679_vm11, %v677_v56, %v1738_v16  ;;  %v874_v29 = vsel %vm679_vm11, %v870_v31, %v1739_v24 }
 0x227   :  { %1661 = vmatmul.msk.f32.gmra.mxu3 %vm949_vm8, %v662_v41  ;;  %1668 = vmatmul.msk.f32.gmra.mxu1 %vm949_vm8, %v662_v41  ;;  %v687_v25 = vsel %vm684_vm13, %v682_v61, %v662_v41  ;;  %v878_v54 = vsel %vm684_vm13, %v874_v29, %v857_v60  ;;  %v826_v33 = vpop.permute.xlu1 %825 }
 0x228   :  { %995 = vmatmul.f32.gmra.mxu2 %v687_v25  ;;  %1065 = vmatmul.f32.gmra.mxu0 %v687_v25  ;;  %v891_v2 = vrot.slane %v878_v54, 4 }
 0x229   :  { %v1022_v57 = vpop.f32.mrf.mxu3 }
 0x22b   :  { %v1747_v17 = vpop.permute.xlu0 %1746 }
 0x22c   :  { %v1749_v19 = vunpack.i.h.bf16 %v1747_v17  ;;  %v1748_v23 = vunpack.i.l.bf16 %v1747_v17 }
 0x22e   :  { %v871_v51 = vsel %vm674_vm12, %v867_v27, %v1749_v19  ;;  %v678_v43 = vsel %vm674_vm12, %v673_v18, %v1748_v23 }
 0x22f   :  { %v875_v8 = vsel %vm679_vm11, %v871_v51, %v826_v33  ;;  %v683_v62 = vsel %vm679_vm11, %v678_v43, %v631_v26 }
 0x230   :  { %v879_v37 = vsel %vm684_vm13, %v875_v8, %v859_v63 }
 0x231   :  { %v893_v10 = vrot.slane %v879_v37, 4 }
 0x233   :  { %v664_v59 = vpop.permute.xlu0 %663  ;;  %v894_v42 = vsel %vm884_vm7, %v891_v2, %v893_v10 }
 0x234   :  { %v688_v15 = vsel %vm684_vm13, %v683_v62, %v664_v59  ;;  %v906_v40 = vsel %vm884_vm7, %v664_v59, %v892_v44 }
 0x235   :  { %1662 = vmatmul.msk.f32.gmra.mxu3 %vm949_vm8, %v906_v40  ;;  %1669 = vmatmul.msk.f32.gmra.mxu1 %vm949_vm8, %v906_v40  ;;  %v905_v6 = vsel %vm884_vm7, %v688_v15, %v891_v2 }
 0x236   :  { %998 = vmatmul.f32.gmra.mxu2 %v905_v6  ;;  %1068 = vmatmul.f32.gmra.mxu0 %v905_v6 }
 0x23d   :  { %1663 = vmatmul.msk.f32.gmra.mxu3 %vm949_vm8, %v896_v50  ;;  %1670 = vmatmul.msk.f32.gmra.mxu1 %vm949_vm8, %v896_v50 }
 0x23e   :  { %1001 = vmatmul.f32.gmra.mxu2 %v894_v42  ;;  %1071 = vmatmul.f32.gmra.mxu0 %v894_v42 }
 0x281   :  { %v1057_v47 = vpop.f32.mrf.mxu0 }
 0x282   :  { %v1058_v13 = vadd.f32 %v1057_v47, %v2551_v46 }
 0x284   :  { %v1093_v34 = vadd.f32 %v1092_v30, %v1058_v13 }
 0x286   :  { %v1111_v20 = vmax.f32 %v1093_v34, 0.0 }
 0x287   :  { %v987_v49 = vpop.f32.mrf.mxu2 }
 0x288   :  { %v988_v38 = vadd.f32 %v987_v49, %v945_v32  ;;  %1136 = vrot.lane.b32.xlu2 %v1111_v20, %s1959_s26 }
 0x28a   :  { %v2555_v9 = vadd.f32 %v1022_v57, %v988_v38 }
 0x28c   :  { %v1110_v22 = vmax.f32 %v2555_v9, 0.0 }
 0x28e   :  { %1134 = vrot.lane.b32.xlu1 %v1110_v22, %s1959_s26 }
 0x294   :  { %v1095_v35 = vpop.f32.mrf.mxu1 }
 0x295   :  { %v1060_v1 = vpop.f32.mrf.mxu0 }
 0x296   :  { %v1061_v28 = vadd.f32 %v1060_v1, %v2551_v46 }
 0x298   :  { %v1096_v53 = vadd.f32 %v1095_v35, %v1061_v28 }
 0x29a   :  { %v1113_v52 = vmax.f32 %v1096_v53, 0.0  ;;  %v1025_v41 = vpop.f32.mrf.mxu3 }
 0x29b   :  { %v990_v45 = vpop.f32.mrf.mxu2 }
 0x29c   :  { %v991_v48 = vadd.f32 %v990_v45, %v945_v32  ;;  %1140 = vrot.lane.b32.xlu1 %v1113_v52, %s1959_s26  ;;  %v1098_v7 = vpop.f32.mrf.mxu1 }
 0x29d   :  { %v1063_v14 = vpop.f32.mrf.mxu0 }
 0x29e   :  { %v1026_v58 = vadd.f32 %v1025_v41, %v991_v48  ;;  %v1064_v0 = vadd.f32 %v1063_v14, %v2551_v46 }
 0x2a0   :  { %v1112_v11 = vmax.f32 %v1026_v58, 0.0  ;;  %v1099_v16 = vadd.f32 %v1098_v7, %v1064_v0 }
 0x2a2   :  { %1138 = vrot.lane.b32.xlu0 %v1112_v11, %s1959_s26  ;;  %v1028_v56 = vpop.f32.mrf.mxu3  ;;  %v1115_v61 = vmax.f32 %v1099_v16, 0.0 }
 0x2a3   :  { %v993_v4 = vpop.f32.mrf.mxu2 }
 0x2a4   :  { %v994_v55 = vadd.f32 %v993_v4, %v945_v32  ;;  %v1101_v24 = vpop.f32.mrf.mxu1 }
 0x2a5   :  { %v1066_v39 = vpop.f32.mrf.mxu0 }
 0x2a6   :  { %v1029_v60 = vadd.f32 %v1028_v56, %v994_v55  ;;  %v1067_v6 = vadd.f32 %v1066_v39, %v2551_v46  ;;  %v1273_v56 = vld [vmem:[#allocation8 + $0x78] sm:$0xff] }
 0x2a7   :  { %1314 = vmatpush.msrb.mxu3 %v1273_v56  ;;  %v1299_v56 = vld [vmem:[#allocation8 + $0x148] sm:$0xff] }
 0x2a8   :  { %v1114_v25 = vmax.f32 %v1029_v60, 0.0  ;;  %v1102_v5 = vadd.f32 %v1101_v24, %v1067_v6  ;;  %v1272_v60 = vld [vmem:[#allocation8 + $0x70] sm:$0xff] }
 0x2a9   :  { %1315 = vmatpush.msrb.mxu3 %v1272_v60  ;;  %v1298_v60 = vld [vmem:[#allocation8 + $0x140] sm:$0xff] }
 0x2aa   :  { %1144 = vrot.lane.b32.xlu0 %v1115_v61, %s1959_s26  ;;  %1142 = vrot.lane.b32.xlu2 %v1114_v25, %s1959_s26  ;;  %v1031_v12 = vpop.f32.mrf.mxu3  ;;  %v1117_v50 = vmax.f32 %v1102_v5, 0.0  ;;  %v1269_v5 = vld [vmem:[#allocation8 + $0x58] sm:$0xff] }
 0x2ab   :  { %v996_v3 = vpop.f32.mrf.mxu2 }
 0x2ac   :  { %v997_v23 = vadd.f32 %v996_v3, %v945_v32 }
 0x2ae   :  { %v2569_v33 = vadd.f32 %v1031_v12, %v997_v23 }
 0x2b0   :  { %v1116_v2 = vmax.f32 %v2569_v33, 0.0 }
 0x2b2   :  { %v1104_v31 = vpop.f32.mrf.mxu1 }
 0x2b3   :  { %v1069_v21 = vpop.f32.mrf.mxu0 }
 0x2b4   :  { %v1070_v17 = vadd.f32 %v1069_v21, %v2551_v46 }
 0x2b6   :  { %v1105_v19 = vadd.f32 %v1104_v31, %v1070_v17 }
 0x2b8   :  { %v1119_v26 = vmax.f32 %v1105_v19, 0.0  ;;  %v1034_v29 = vpop.f32.mrf.mxu3 }
 0x2b9   :  { %v999_v18 = vpop.f32.mrf.mxu2 }
 0x2ba   :  { %v1000_v27 = vadd.f32 %v999_v18, %v945_v32  ;;  %1152 = vrot.lane.b32.xlu1 %v1119_v26, %s1959_s26  ;;  %v1107_v8 = vpop.f32.mrf.mxu1 }
 0x2bb   :  { %v1072_v54 = vpop.f32.mrf.mxu0 }
 0x2bc   :  { %v1035_v51 = vadd.f32 %v1034_v29, %v1000_v27  ;;  %v1073_v44 = vadd.f32 %v1072_v54, %v2551_v46 }
 0x2be   :  { %v1118_v43 = vmax.f32 %v1035_v51, 0.0  ;;  %v1108_v62 = vadd.f32 %v1107_v8, %v1073_v44 }
 0x2c0   :  { %1150 = vrot.lane.b32.xlu0 %v1118_v43, %s1959_s26  ;;  %v1037_v40 = vpop.f32.mrf.mxu3  ;;  %v1121_v37 = vmax.f32 %v1108_v62, 0.0 }
 0x2c1   :  { %v1002_v59 = vpop.f32.mrf.mxu2 }
 0x2c2   :  { %v1003_v15 = vadd.f32 %v1002_v59, %v945_v32  ;;  %1146 = vrot.lane.b32.xlu1 %v1116_v2, %s1959_s26 }
 0x2c4   :  { %v1038_v63 = vadd.f32 %v1037_v40, %v1003_v15 }
 0x2c6   :  { %v1120_v10 = vmax.f32 %v1038_v63, 0.0 }
 0x2c8   :  { %1154 = vrot.lane.b32.xlu2 %v1120_v10, %s1959_s26  ;;  %1156 = vrot.lane.b32.xlu0 %v1121_v37, %s1959_s26 }
 0x2d0   :  { %1148 = vrot.lane.b32.xlu2 %v1117_v50, %s1959_s26  ;;  %v1289_v50 = vld [vmem:[#allocation8 + $0xf8] sm:$0xff] }
 0x2d1   :  { %1337 = vmatpush.msrb.mxu2 %v1289_v50 }
 0x2e2   :  { %v1137_v36 = vpop.permute.xlu2 %1136 }
 0x300   :  { %v1135_v42 = vpop.permute.xlu1 %1134 }
 0x301   :  { %v1158_v49 = vsel %vm674_vm12, %v1135_v42, %v1137_v36  ;;  %v1288_v42 = vld [vmem:[#allocation8 + $0xf0] sm:$0xff] }
 0x302   :  { %v1170_v28 = vmax.f32 %v1110_v22, %v1158_v49  ;;  %v1268_v36 = vld [vmem:[#allocation8 + $0x50] sm:$0xff]  ;;  %1338 = vmatpush.msrb.mxu2 %v1288_v42 }
 0x303   :  { %v1264_v49 = vld [vmem:[#allocation8 + $0x30] sm:$0xff] }
 0x304   :  { %v1143_v34 = vpop.permute.xlu2 %1142 }
 0x30e   :  { %v1141_v13 = vpop.permute.xlu1 %1140 }
 0x314   :  { %v1139_v47 = vpop.permute.xlu0 %1138 }
 0x315   :  { %v1159_v30 = vsel %vm674_vm12, %v1139_v47, %v1141_v13  ;;  %v1287_v47 = vld [vmem:[#allocation8 + $0xe8] sm:$0xff] }
 0x316   :  { %v1171_v32 = vmax.f32 %v1112_v11, %v1159_v30  ;;  %v1267_v13 = vld [vmem:[#allocation8 + $0x48] sm:$0xff]  ;;  %v1286_v30 = vld [vmem:[#allocation8 + $0xe0] sm:$0xff]  ;;  %1339 = vmatpush.msrb.mxu2 %v1287_v47 }
 0x318   :  { %v1180_v57 = vrot.slane %v1171_v32, 4  ;;  %1340 = vmatpush.msrb.mxu2 %v1286_v30 }
 0x31c   :  { %v1145_v20 = vpop.permute.xlu0 %1144 }
 0x31d   :  { %v1160_v46 = vsel %vm674_vm12, %v1143_v34, %v1145_v20  ;;  %v1266_v34 = vld [vmem:[#allocation8 + $0x40] sm:$0xff]  ;;  %v1265_v20 = vld [vmem:[#allocation8 + $0x38] sm:$0xff] }
 0x31e   :  { %v1172_v38 = vmax.f32 %v1114_v25, %v1160_v46  ;;  %v1271_v25 = vld [vmem:[#allocation8 + $0x68] sm:$0xff]  ;;  %v1284_v46 = vld [vmem:[#allocation8 + $0xd0] sm:$0xff] }
 0x31f   :  { %1316 = vmatpush.msrb.mxu3 %v1271_v25  ;;  %v1296_v25 = vld [vmem:[#allocation8 + $0x130] sm:$0xff] }
 0x320   :  { %v1181_v1 = vrot.slane %v1172_v38, 4  ;;  %v1283_v38 = vld [vmem:[#allocation8 + $0xc8] sm:$0xff] }
 0x322   :  { %v1182_v35 = vsel %vm884_vm7, %v1180_v57, %v1181_v1  ;;  %v1191_v53 = vmax.f32 %v1171_v32, %v1181_v1  ;;  %v1155_v4 = vpop.permute.xlu2 %1154  ;;  %v1285_v32 = vld [vmem:[#allocation8 + $0xd8] sm:$0xff]  ;;  %v1263_v57 = vld [vmem:[#allocation8 + $0x28] sm:$0xff]  ;;  %v1282_v1 = vld [vmem:[#allocation8 + $0xc0] sm:$0xff] }
 0x323   :  { %v2587_v52 = vmax.f32 %v1170_v28, %v1182_v35  ;;  %1341 = vmatpush.msrb.mxu2 %v1285_v32  ;;  %v1262_v28 = vld [vmem:[#allocation8 + $0x20] sm:$0xff]  ;;  %v1281_v35 = vld [vmem:[#allocation8 + $0xb8] sm:$0xff] }
 0x324   :  { %v1211_v41 = vrot.slane %v1191_v53, 2  ;;  %v1199_v45 = vrot.slane %v1191_v53, 1  ;;  %v1223_v22 = vrot.slane %v1191_v53, 3  ;;  %v1235_v15 = vrot.slane %v1191_v53, 4  ;;  %v1261_v53 = vld [vmem:[#allocation8 + $0x18] sm:$0xff] }
 0x325   :  { %v1210_v48 = vrot.slane %v2587_v52, 2  ;;  %v1198_v14 = vrot.slane %v2587_v52, 1  ;;  %v1222_v9 = vrot.slane %v2587_v52, 3  ;;  %1342 = vmatpush.msrb.mxu2 %v1284_v46 }
 0x327   :  { %v1212_v58 = vsel %vm158_vm0, %v1210_v48, %v1211_v41  ;;  %v1200_v11 = vsel %vm324_vm9, %v1198_v14, %v1199_v45  ;;  %v1224_v7 = vsel %vm335_vm3, %v1222_v9, %v1223_v22  ;;  %1343 = vmatpush.msrb.mxu2 %v1283_v38  ;;  %v1280_v41 = vld [vmem:[#allocation8 + $0xb0] sm:$0xff]  ;;  %v1279_v48 = vld [vmem:[#allocation8 + $0xa8] sm:$0xff]  ;;  %v1277_v9 = vld [vmem:[#allocation8 + $0x98] sm:$0xff] }
 0x328   :  { %1216 = vrot.lane.b32.xlu2 %v1212_v58, %s1954_s28  ;;  %1204 = vrot.lane.b32.xlu0 %v1200_v11, %s1961_s4  ;;  %v1260_v45 = vld [vmem:[#allocation8 + $0x10] sm:$0xff]  ;;  %v1259_v14 = vld [vmem:[#allocation8 + $0x8] sm:$0xff]  ;;  %v1258_v58 = vld [vmem:[#allocation8] sm:$0xff] }
 0x329   :  { %1344 = vmatpush.msrb.mxu2 %v1282_v1  ;;  %v1278_v11 = vld [vmem:[#allocation8 + $0xa0] sm:$0xff]  ;;  %v1276_v22 = vld [vmem:[#allocation8 + $0x90] sm:$0xff] }
 0x32a   :  { %v1149_v12 = vpop.permute.xlu2 %1148 }
 0x32b   :  { %1345 = vmatpush.msrb.mxu2 %v1281_v35 }
 0x32c   :  { %v1153_v0 = vpop.permute.xlu1 %1152 }
 0x32d   :  { %1346 = vmatpush.msrb.mxu2 %v1280_v41 }
 0x32f   :  { %1347 = vmatpush.msrb.mxu2 %v1279_v48 }
 0x330   :  { %1228 = vrot.lane.b32.xlu0 %v1224_v7, %s1962_s30  ;;  %v1274_v7 = vld [vmem:[#allocation8 + $0x80] sm:$0xff] }
 0x331   :  { %1348 = vmatpush.msrb.mxu2 %v1278_v11 }
 0x332   :  { %v1151_v16 = vpop.permute.xlu0 %1150 }
 0x333   :  { %v1162_v55 = vsel %vm674_vm12, %v1151_v16, %v1153_v0  ;;  %1349 = vmatpush.msrb.mxu2 %v1277_v9  ;;  %v1275_v0 = vld [vmem:[#allocation8 + $0x88] sm:$0xff]  ;;  %v1301_v16 = vld [vmem:[#allocation8 + $0x158] sm:$0xff] }
 0x334   :  { %v1147_v61 = vpop.permute.xlu1 %1146  ;;  %v1174_v39 = vmax.f32 %v1118_v43, %v1162_v55  ;;  %v1300_v55 = vld [vmem:[#allocation8 + $0x150] sm:$0xff] }
 0x335   :  { %v1161_v21 = vsel %vm674_vm12, %v1147_v61, %v1149_v12  ;;  %1350 = vmatpush.msrb.mxu2 %v1276_v22  ;;  %v1297_v61 = vld [vmem:[#allocation8 + $0x138] sm:$0xff]  ;;  %v1294_v12 = vld [vmem:[#allocation8 + $0x120] sm:$0xff] }
 0x336   :  { %v1183_v31 = vrot.slane %v1174_v39, 4  ;;  %v1173_v23 = vmax.f32 %v1116_v2, %v1161_v21  ;;  %v1234_v2 = vrot.slane %v2587_v52, 4  ;;  %v1293_v21 = vld [vmem:[#allocation8 + $0x118] sm:$0xff]  ;;  %v1467_v22 = vld [vmem:[#allocation10 + $0x78] sm:$0xff] }
 0x337   :  { %1351 = vmatpush.msrb.mxu2 %v1275_v0  ;;  %v1483_v0 = vld [vmem:[#allocation10 + $0xf8] sm:$0xff]  ;;  %1499 = vmatpush.msra.mxu0 %v1467_v22 }
 0x338   :  { %v1236_v40 = vsel %vm884_vm7, %v1234_v2, %v1235_v15  ;;  %1519 = vmatpush.msra.mxu1 %v1483_v0 }
 0x339   :  { %1352 = vmatpush.msrb.mxu2 %v1274_v7  ;;  %v1466_v7 = vld [vmem:[#allocation10 + $0x70] sm:$0xff] }
 0x33a   :  { %v1157_v24 = vpop.permute.xlu0 %1156  ;;  %1500 = vmatpush.msra.mxu0 %v1466_v7 }
 0x33b   :  { %v1163_v3 = vsel %vm674_vm12, %v1155_v4, %v1157_v24  ;;  %v1302_v4 = vld [vmem:[#allocation8 + $0x160] sm:$0xff] }
 0x33c   :  { %v1175_v17 = vmax.f32 %v1120_v10, %v1163_v3  ;;  %v1270_v10 = vld [vmem:[#allocation8 + $0x60] sm:$0xff] }
 0x33d   :  { %1317 = vmatpush.msrb.mxu3 %v1270_v10 }
 0x33e   :  { %v1184_v19 = vrot.slane %v1175_v17, 4  ;;  %v1292_v17 = vld [vmem:[#allocation8 + $0x110] sm:$0xff] }
 0x33f   :  { %1318 = vmatpush.msrb.mxu3 %v1269_v5 }
 0x340   :  { %v1185_v26 = vsel %vm884_vm7, %v1183_v31, %v1184_v19  ;;  %v1193_v29 = vmax.f32 %v1174_v39, %v1184_v19  ;;  %v1295_v39 = vld [vmem:[#allocation8 + $0x128] sm:$0xff] }
 0x341   :  { %v2604_v18 = vmax.f32 %v1173_v23, %v1185_v26  ;;  %1319 = vmatpush.msrb.mxu3 %v1268_v36  ;;  %v1291_v31 = vld [vmem:[#allocation8 + $0x108] sm:$0xff] }
 0x342   :  { %v1226_v27 = vrot.slane %v1193_v29, 3  ;;  %v1214_v54 = vrot.slane %v1193_v29, 2  ;;  %v1202_v51 = vrot.slane %v1193_v29, 1  ;;  %v1238_v6 = vrot.slane %v1193_v29, 4  ;;  %v1290_v29 = vld [vmem:[#allocation8 + $0x100] sm:$0xff] }
 0x343   :  { %v1225_v43 = vrot.slane %v2604_v18, 3  ;;  %v1213_v44 = vrot.slane %v2604_v18, 2  ;;  %v1201_v8 = vrot.slane %v2604_v18, 1  ;;  %v1237_v63 = vrot.slane %v2604_v18, 4  ;;  %1320 = vmatpush.msrb.mxu3 %v1267_v13 }
 0x345   :  { %v1227_v59 = vsel %vm335_vm3, %v1225_v43, %v1226_v27  ;;  %v1215_v62 = vsel %vm158_vm0, %v1213_v44, %v1214_v54  ;;  %v1203_v33 = vsel %vm324_vm9, %v1201_v8, %v1202_v51  ;;  %v1239_v37 = vsel %vm884_vm7, %v1237_v63, %v1238_v6  ;;  %1321 = vmatpush.msrb.mxu3 %v1266_v34  ;;  %v1765_v63 = vld [vmem:[%s2696_s6] ss:$0 sm:$0xff]  ;;  %s1964_s6 = smov 64  }
 0x346   :  { %1230 = vrot.lane.b32.xlu0 %v1227_v59, %s1962_s30  ;;  %1218 = vrot.lane.b32.xlu2 %v1215_v62, %s1954_s28  ;;  %vm1246_vm0 = vcmask 588800   ;;  %vm1249_vm9 = vcmask 130048   ;;  %vm1252_vm3 = vcmask 719872  }
 0x347   :  { %1206 = vrot.lane.b32.xlu1 %v1203_v33, %s1961_s4  ;;  %1322 = vmatpush.msrb.mxu3 %v1265_v20 }
 0x349   :  { %1323 = vmatpush.msrb.mxu3 %v1264_v49 }
 0x34b   :  { %1324 = vmatpush.msrb.mxu3 %v1263_v57 }
 0x34d   :  { %1325 = vmatpush.msrb.mxu3 %v1262_v28 }
 0x34f   :  { %1240 = vrot.lane.b32.xlu1 %v1236_v40, %s1963_s14  ;;  %1326 = vmatpush.msrb.mxu3 %v1261_v53 }
 0x351   :  { %1327 = vmatpush.msrb.mxu3 %v1260_v45 }
 0x353   :  { %1328 = vmatpush.msrb.mxu3 %v1259_v14 }
 0x355   :  { %1329 = vmatpush.msrb.mxu3 %v1258_v58 }
 0x357   :  { %1242 = vrot.lane.b32.xlu1 %v1239_v37, %s1963_s14  ;;  %1363 = vmatpush.msra.mxu3 %v1302_v4  ;;  %v1482_v4 = vld [vmem:[#allocation10 + $0xf0] sm:$0xff] }
 0x358   :  { %1520 = vmatpush.msra.mxu1 %v1482_v4 }
 0x359   :  { %1364 = vmatpush.msra.mxu3 %v1301_v16  ;;  %v1465_v16 = vld [vmem:[#allocation10 + $0x68] sm:$0xff] }
 0x35a   :  { %1501 = vmatpush.msra.mxu0 %v1465_v16 }
 0x35b   :  { %1365 = vmatpush.msra.mxu3 %v1300_v55  ;;  %v1481_v55 = vld [vmem:[#allocation10 + $0xe8] sm:$0xff] }
 0x35c   :  { %1521 = vmatpush.msra.mxu1 %v1481_v55 }
 0x35d   :  { %1366 = vmatpush.msra.mxu3 %v1299_v56  ;;  %v1464_v56 = vld [vmem:[#allocation10 + $0x60] sm:$0xff] }
 0x35e   :  { %1502 = vmatpush.msra.mxu0 %v1464_v56  ;;  %v1543_v56 = vld [vmem:[%s2699_s9 + $0x18] sm:$0xff] }
 0x35f   :  { %1367 = vmatpush.msra.mxu3 %v1298_v60  ;;  %v1480_v60 = vld [vmem:[#allocation10 + $0xe0] sm:$0xff] }
 0x360   :  { %1522 = vmatpush.msra.mxu1 %v1480_v60  ;;  %v1542_v60 = vld [vmem:[%s2699_s9 + $0x10] sm:$0xff] }
 0x361   :  { %1368 = vmatpush.msra.mxu3 %v1297_v61  ;;  %v1463_v61 = vld [vmem:[#allocation10 + $0x58] sm:$0xff] }
 0x362   :  { %1503 = vmatpush.msra.mxu0 %v1463_v61  ;;  %v1541_v61 = vld [vmem:[%s2699_s9 + $0x8] sm:$0xff] }
 0x363   :  { %1369 = vmatpush.msra.mxu3 %v1296_v25  ;;  %v1479_v25 = vld [vmem:[#allocation10 + $0xd8] sm:$0xff] }
 0x364   :  { %1523 = vmatpush.msra.mxu1 %v1479_v25  ;;  %v1540_v25 = vld [vmem:[%s2699_s9] sm:$0xff] }
 0x365   :  { %1370 = vmatpush.msra.mxu3 %v1295_v39  ;;  %v1462_v39 = vld [vmem:[#allocation10 + $0x50] sm:$0xff] }
 0x366   :  { %1504 = vmatpush.msra.mxu0 %v1462_v39  ;;  %v1594_v39 = vld [vmem:[#allocation11 + $0x50] sm:$0xf] }
 0x367   :  { %1371 = vmatpush.msra.mxu3 %v1294_v12  ;;  %v1461_v12 = vld [vmem:[#allocation10 + $0x48] sm:$0xff]  ;;  %1674 = vmatpush.msk.msra.mxu2 %vm884_vm7, %v1594_v39  ;;  %vm1625_vm7 = vcmask 74752  }
 0x368   :  { %1505 = vmatpush.msra.mxu0 %v1461_v12  ;;  %v1592_v12 = vld [vmem:[#allocation11 + $0x40] sm:$0xff] }
 0x369   :  { %1372 = vmatpush.msra.mxu3 %v1293_v21  ;;  %v1460_v21 = vld [vmem:[#allocation10 + $0x40] sm:$0xff] }
 0x36a   :  { %1506 = vmatpush.msra.mxu0 %v1460_v21  ;;  %v1590_v21 = vld [vmem:[#allocation11 + $0x30] sm:$0xff] }
 0x36b   :  { %1373 = vmatpush.msra.mxu3 %v1292_v17  ;;  %v1476_v17 = vld [vmem:[#allocation10 + $0xc0] sm:$0xff] }
 0x36d   :  { %1374 = vmatpush.msra.mxu3 %v1291_v31  ;;  %v1459_v31 = vld [vmem:[#allocation10 + $0x38] sm:$0xff] }
 0x36e   :  { %1507 = vmatpush.msra.mxu0 %v1459_v31  ;;  %v1588_v31 = vld [vmem:[#allocation11 + $0x20] sm:$0xff] }
 0x36f   :  { %1375 = vmatpush.msra.mxu3 %v1290_v29  ;;  %v1457_v29 = vld [vmem:[#allocation10 + $0x28] sm:$0xff] }
 0x382   :  { %v1217_v19 = vpop.permute.xlu2 %1216 }
 0x39a   :  { %v1205_v24 = vpop.permute.xlu0 %1204 }
 0x39b   :  { %v1247_v3 = vsel %vm1246_vm0, %v2587_v52, %v1205_v24  ;;  %v1250_v23 = vsel %vm1249_vm9, %v1205_v24, %v1217_v19  ;;  %v1478_v24 = vld [vmem:[#allocation10 + $0xd0] sm:$0xff]  ;;  %v1475_v19 = vld [vmem:[#allocation10 + $0xb8] sm:$0xff] }
 0x39c   :  { %1330 = vmatmul.f32.vlgmr.msrb.gmra.mxu3 %v1247_v3  ;;  %v1477_v3 = vld [vmem:[#allocation10 + $0xc8] sm:$0xff]  ;;  %1524 = vmatpush.msra.mxu1 %v1478_v24 }
 0x39d   :  { %v1593_v24 = vld [vmem:[#allocation11 + $0x48] sm:$0xff] }
 0x39e   :  { %1525 = vmatpush.msra.mxu1 %v1477_v3  ;;  %1611 = vmatpush.msra.mxu2 %v1593_v24  ;;  %v1591_v3 = vld [vmem:[#allocation11 + $0x38] sm:$0xff] }
 0x3a0   :  { %v1219_v51 = vpop.permute.xlu2 %1218  ;;  %1526 = vmatpush.msra.mxu1 %v1476_v17  ;;  %1612 = vmatpush.msra.mxu2 %v1592_v12  ;;  %v1589_v17 = vld [vmem:[#allocation11 + $0x28] sm:$0xff] }
 0x3a2   :  { %v1229_v26 = vpop.permute.xlu0 %1228  ;;  %1527 = vmatpush.msra.mxu1 %v1475_v19  ;;  %1613 = vmatpush.msra.mxu2 %v1591_v3  ;;  %v1587_v19 = vld [vmem:[#allocation11 + $0x18] sm:$0xff] }
 0x3a3   :  { %v1253_v27 = vsel %vm1252_vm3, %v1250_v23, %v1229_v26  ;;  %v1458_v23 = vld [vmem:[#allocation10 + $0x30] sm:$0xff] }
 0x3a4   :  { %1353 = vmatmul.f32.vlgmr.msrb.gmra.mxu2 %v1253_v27  ;;  %v1473_v27 = vld [vmem:[#allocation10 + $0xa8] sm:$0xff]  ;;  %1508 = vmatpush.msra.mxu0 %v1458_v23  ;;  %v1766_v23 = vld [vmem:[%s2698_s8] ss:$0 sm:$0xff] }
 0x3a5   :  { %1614 = vmatpush.msra.mxu2 %v1590_v21 }
 0x3a6   :  { %1509 = vmatpush.msra.mxu0 %v1457_v29 }
 0x3a7   :  { %1615 = vmatpush.msra.mxu2 %v1589_v17 }
 0x3a9   :  { %1616 = vmatpush.msra.mxu2 %v1588_v31 }
 0x3ab   :  { %1617 = vmatpush.msra.mxu2 %v1587_v19 }
 0x3b8   :  { %v1231_v54 = vpop.permute.xlu0 %1230 }
 0x3b9   :  { %v1207_v52 = vpop.permute.xlu1 %1206 }
 0x3ba   :  { %v1251_v43 = vsel %vm1249_vm9, %v1207_v52, %v1219_v51  ;;  %v1248_v44 = vsel %vm1246_vm0, %v2604_v18, %v1207_v52  ;;  %v1472_v51 = vld [vmem:[#allocation10 + $0xa0] sm:$0xff]  ;;  %v1455_v52 = vld [vmem:[#allocation10 + $0x18] sm:$0xff] }
 0x3bb   :  { %1333 = vmatmul.f32.gmra.mxu3 %v1248_v44  ;;  %v1254_v8 = vsel %vm1252_vm3, %v1251_v43, %v1231_v54  ;;  %v1471_v43 = vld [vmem:[#allocation10 + $0x98] sm:$0xff] }
 0x3bc   :  { %1356 = vmatmul.f32.gmra.mxu2 %v1254_v8 }
 0x3c1   :  { %v1241_v59 = vpop.permute.xlu1 %1240 }
 0x3c2   :  { %v1256_v62 = vsel %vm1255_vm14, %v1229_v26, %v1241_v59  ;;  %v1474_v26 = vld [vmem:[#allocation10 + $0xb0] sm:$0xff] }
 0x3c3   :  { %1671 = vmatmul.msk.f32.vlgmr.msra.gmra.mxu3 %vm1307_vm15, %v1256_v62  ;;  %1528 = vmatpush.msra.mxu1 %v1474_v26  ;;  %v1454_v62 = vld [vmem:[#allocation10 + $0x10] sm:$0xff] }
 0x3c5   :  { %1529 = vmatpush.msra.mxu1 %v1473_v27 }
 0x3c7   :  { %1530 = vmatpush.msra.mxu1 %v1472_v51 }
 0x3c9   :  { %v1243_v33 = vpop.permute.xlu1 %1242  ;;  %1531 = vmatpush.msra.mxu1 %v1471_v43  ;;  %v1585_v43 = vld [vmem:[#allocation11 + $0x8] sm:$0xff] }
 0x3ca   :  { %v1257_v2 = vsel %vm1255_vm14, %v1231_v54, %v1243_v33  ;;  %v1456_v54 = vld [vmem:[#allocation10 + $0x20] sm:$0xff]  ;;  %v1470_v33 = vld [vmem:[#allocation10 + $0x90] sm:$0xff] }
 0x3cb   :  { %1672 = vmatmul.msk.f32.gmra.mxu3 %vm1307_vm15, %v1257_v2  ;;  %1510 = vmatpush.msra.mxu0 %v1456_v54 }
 0x3cc   :  { %1532 = vmatpush.msra.mxu1 %v1470_v33 }
 0x3cd   :  { %1511 = vmatpush.msra.mxu0 %v1455_v52  ;;  %v1586_v52 = vld [vmem:[#allocation11 + $0x10] sm:$0xff] }
 0x3ce   :  { %1618 = vmatpush.msra.mxu2 %v1586_v52 }
 0x3cf   :  { %1512 = vmatpush.msra.mxu0 %v1454_v62 }
 0x3d0   :  { %1619 = vmatpush.msra.mxu2 %v1585_v43 }
 0x41f   :  { %v1331_v15 = vpop.f32.mrf.mxu3 }
 0x420   :  { %v1332_v37 = vadd.f32 %v1765_v63, %v1331_v15 }
 0x427   :  { %v1354_v6 = vpop.f32.mrf.mxu2 }
 0x428   :  { %v1355_v18 = vadd.f32 %v1354_v6, %v1332_v37 }
 0x43e   :  { %v1334_v40 = vpop.f32.mrf.mxu3 }
 0x43f   :  { %v1335_v50 = vadd.f32 %v1765_v63, %v1334_v40  ;;  %v1357_v36 = vpop.f32.mrf.mxu2 }
 0x441   :  { %v1358_v13 = vadd.f32 %v1357_v36, %v1335_v50  ;;  %v1469_v50 = vld [vmem:[#allocation10 + $0x88] sm:$0xff]  ;;  %v1468_v36 = vld [vmem:[#allocation10 + $0x80] sm:$0xff] }
 0x442   :  { %1533 = vmatpush.msra.mxu1 %v1469_v50 }
 0x444   :  { %1534 = vmatpush.msra.mxu1 %v1468_v36 }
 0x446   :  { %v1377_v10 = vpop.f32.mrf.mxu3 }
 0x447   :  { %v1378_v5 = vadd.f32 %v1377_v10, %v1355_v18 }
 0x449   :  { %v1383_v42 = vmax.f32 %v1378_v5, 0.0  ;;  %v1453_v5 = vld [vmem:[#allocation10 + $0x8] sm:$0xff] }
 0x44a   :  { %1513 = vmatpush.msra.mxu0 %v1453_v5 }
 0x44b   :  { %v1387_v47 = vrot.slane %v1383_v42, 1 }
 0x44d   :  { %v1391_v30 = vmax.f32 %v1383_v42, %v1387_v47  ;;  %v1452_v42 = vld [vmem:[#allocation10] sm:$0xff] }
 0x44e   :  { %v1380_v34 = vpop.f32.mrf.mxu3  ;;  %1514 = vmatpush.msra.mxu0 %v1452_v42  ;;  %v1554_v47 = vld [vmem:[%s2699_s9 + $0x70] sm:$0xff] }
 0x44f   :  { %v1381_v32 = vadd.f32 %v1380_v34, %v1358_v13  ;;  %v1395_v20 = vrot.slane %v1391_v30, 1  ;;  %v1399_v38 = vrot.slane %v1391_v30, 2  ;;  %v1403_v41 = vrot.slane %v1391_v30, 3  ;;  %v1553_v13 = vld [vmem:[%s2699_s9 + $0x68] sm:$0xff]  ;;  %1564 = vmatpush.msrb.mxu3 %v1554_v47  ;;  %v1551_v34 = vld [vmem:[%s2699_s9 + $0x58] sm:$0xff] }
 0x451   :  { %v1384_v46 = vmax.f32 %v1381_v32, 0.0  ;;  %v1407_v1 = vsel %vm287_vm2, %v1391_v30, %v1395_v20  ;;  %v1552_v30 = vld [vmem:[%s2699_s9 + $0x60] sm:$0xff]  ;;  %1565 = vmatpush.msrb.mxu3 %v1553_v13  ;;  %v1550_v32 = vld [vmem:[%s2699_s9 + $0x50] sm:$0xff]  ;;  %v1549_v20 = vld [vmem:[%s2699_s9 + $0x48] sm:$0xff] }
 0x452   :  { %v1410_v53 = vsel %vm1409_vm1, %v1407_v1, %v1399_v38  ;;  %v1546_v38 = vld [vmem:[%s2699_s9 + $0x30] sm:$0xff]  ;;  %v1544_v1 = vld [vmem:[%s2699_s9 + $0x20] sm:$0xff] }
 0x453   :  { %v1388_v49 = vrot.slane %v1384_v46, 1  ;;  %v1413_v58 = vsel %vm1412_vm4, %v1410_v53, %v1403_v41  ;;  %1566 = vmatpush.msrb.mxu3 %v1552_v30 }
 0x455   :  { %v1392_v57 = vmax.f32 %v1384_v46, %v1388_v49  ;;  %1567 = vmatpush.msrb.mxu3 %v1551_v34  ;;  %v1548_v46 = vld [vmem:[%s2699_s9 + $0x40] sm:$0xff]  ;;  %v1547_v49 = vld [vmem:[%s2699_s9 + $0x38] sm:$0xff] }
 0x457   :  { %v1396_v28 = vrot.slane %v1392_v57, 1  ;;  %v1400_v35 = vrot.slane %v1392_v57, 2  ;;  %v1404_v45 = vrot.slane %v1392_v57, 3  ;;  %1568 = vmatpush.msrb.mxu3 %v1550_v32 }
 0x459   :  { %v1408_v48 = vsel %vm287_vm2, %v1392_v57, %v1396_v28  ;;  %1569 = vmatpush.msrb.mxu3 %v1549_v20  ;;  %v1545_v57 = vld [vmem:[%s2699_s9 + $0x28] sm:$0xff]  ;;  %vm1447_vm2 = vcmask 523264  }
 0x45a   :  { %v1411_v14 = vsel %vm1409_vm1, %v1408_v48, %v1400_v35 }
 0x45b   :  { %v1414_v11 = vsel %vm1412_vm4, %v1411_v14, %v1404_v45  ;;  %1570 = vmatpush.msrb.mxu3 %v1548_v46 }
 0x45c   :  { %v1750_v9 = vpack.i.bf16 %v1413_v58, %v1414_v11 }
 0x45d   :  { %1571 = vmatpush.msrb.mxu3 %v1547_v49 }
 0x45e   :  { %1751 = vrot.lane.b32.xlu2 %v1750_v9, %s1964_s6 }
 0x45f   :  { %1572 = vmatpush.msrb.mxu3 %v1546_v38 }
 0x461   :  { %1573 = vmatpush.msrb.mxu3 %v1545_v57 }
 0x463   :  { %1574 = vmatpush.msrb.mxu3 %v1544_v1 }
 0x465   :  { %1575 = vmatpush.msrb.mxu3 %v1543_v56 }
 0x467   :  { %1576 = vmatpush.msrb.mxu3 %v1542_v60 }
 0x469   :  { %1577 = vmatpush.msrb.mxu3 %v1541_v61 }
 0x46b   :  { %1578 = vmatpush.msrb.mxu3 %v1540_v25 }
 0x4b8   :  { %v1752_v44 = vpop.permute.xlu2 %1751 }
 0x4b9   :  { %v1754_v8 = vunpack.i.h.bf16 %v1752_v44  ;;  %v1753_v59 = vunpack.i.l.bf16 %v1752_v44  ;;  %v1584_v44 = vld [vmem:[#allocation11] sm:$0xff] }
 0x4ba   :  { %1620 = vmatpush.msra.mxu2 %v1584_v44 }
 0x4bb   :  { %v1423_v2 = vmax.f32 %v1413_v58, %v1754_v8  ;;  %v1424_v15 = vmax.f32 %v1414_v11, %v1753_v59  ;;  %v1767_v8 = vld [vmem:[%s2700_s10] ss:$0 sm:$0xff] }
 0x4bd   :  { %v1439_v40 = vrot.slane %v1423_v2, 3  ;;  %v1440_v63 = vrot.slane %v1424_v15, 3  ;;  %v1427_v6 = vrot.slane %v1423_v2, 1  ;;  %v1428_v37 = vrot.slane %v1424_v15, 1 }
 0x4be   :  { %v1436_v35 = vrot.slane %v1424_v15, 2  ;;  %v1435_v58 = vrot.slane %v1423_v2, 2 }
 0x4bf   :  { %v1760_v18 = vpack.i.bf16 %v1439_v40, %v1440_v63  ;;  %v1755_v10 = vpack.i.bf16 %v1427_v6, %v1428_v37 }
 0x4c1   :  { %1761 = vrot.lane.b32.xlu1 %v1760_v18, %s1964_s6  ;;  %1756 = vrot.lane.b32.xlu0 %v1755_v10, %s1964_s6 }
 0x533   :  { %v1762_v28 = vpop.permute.xlu1 %1761  ;;  %v1757_v53 = vpop.permute.xlu0 %1756 }
 0x534   :  { %v1764_v41 = vunpack.i.h.bf16 %v1762_v28  ;;  %v1763_v45 = vunpack.i.l.bf16 %v1762_v28  ;;  %v1759_v48 = vunpack.i.h.bf16 %v1757_v53  ;;  %v1758_v14 = vunpack.i.l.bf16 %v1757_v53 }
 0x536   :  { %v1451_v11 = vsel %vm1447_vm2, %v1436_v35, %v1763_v45  ;;  %v1449_v9 = vsel %vm1447_vm2, %v1424_v15, %v1758_v14  ;;  %v1450_v7 = vsel %vm1447_vm2, %v1435_v58, %v1764_v41  ;;  %v1448_v4 = vsel %vm1447_vm2, %v1423_v2, %v1759_v48  ;;  %v1768_v2 = vld [vmem:[%s2702_s12] ss:$0 sm:$0xff] }
 0x537   :  { %v1495_v22 = vrot.slane %v1451_v11, 7  ;;  %v1492_v0 = vrot.slane %v1449_v9, 7 }
 0x539   :  { %v1494_v16 = vsel %vm1493_vm5, %v1492_v0, %v1448_v4  ;;  %v1496_v55 = vsel %vm1493_vm5, %v1495_v22, %v1450_v7 }
 0x53a   :  { %1515 = vmatmul.f32.vlgmr.msra.gmra.mxu0 %v1494_v16  ;;  %1535 = vmatmul.f32.vlgmr.msra.gmra.mxu1 %v1496_v55 }
 0x5b7   :  { %v1516_v26 = vpop.f32.mrf.mxu0  ;;  %v1536_v27 = vpop.f32.mrf.mxu1 }
 0x5b8   :  { %v1517_v29 = vadd.f32 %v1766_v23, %v1516_v26 }
 0x5ba   :  { %v1537_v54 = vadd.f32 %v1536_v27, %v1517_v29 }
 0x5bc   :  { %v1539_v51 = vmax.f32 %v1537_v54, 0.0 }
 0x5be   :  { %1673 = vmatmul.msk.f32.vlgmr.msrb.gmra.mxu3 %vm1559_vm6, %v1539_v51 }
 0x641   :  { %v1580_v59 = vpop.f32.mrf.mxu3 }
 0x642   :  { %v1581_v62 = vadd.f32 %v1767_v8, %v1580_v59 }
 0x644   :  { %v1583_v33 = vmax.f32 %v1581_v62, 0.0 }
 0x646   :  { %1675 = vmatmul.msk.f32.vlgmr.msra.gmra.mxu2 %vm679_vm11, %v1583_v33 }
 0x6c9   :  { %v1622_v15 = vpop.f32.mrf.mxu2 }
 0x6ca   :  { %v1623_v40 = vadd.f32 %v1768_v2, %v1622_v15 }
 0x6cc   :  { %1626 = vst.msk [vmem:[#allocation13] sm:$0x3] %vm1625_vm7, %v1623_v40 }
 0x6cd   :  { %1637 = dma.vmem_to_hbm [thread:$0]  %s1633_s17, 32, %s1635_s23, [#allocation4]  }
 0x6ce   :  { %1945 = dma.done.wait [#allocation4], 32  }
 0x6cf   :  { %1946 = vsyncadd [#allocation4], 4294967264 }
 0x6d0   :  { %1642 = vsyncpa [#allocation3], 1 }
 0x6d1   :  { %1643 = vsyncpa [#allocation6], 1 }
 0x6d2   :  { %1644 = vsyncpa [#allocation9], 1 }
 0x6d3   :  { %1645 = vsyncpa [#allocation12], 1 }
 0x6d4   :  { %1646 = vsyncpa [#allocation4], 1 }

</bundles_post_ra>
